<compile_context>
chip_gen: v6e
topology: v6e:2x2x1
jax: 0.10.0
libtpu: 0.0.40
codegen_flags: <defaults>
</compile_context>

<pallas_src>
import functools

import jax
import jax.numpy as jnp
from jax.experimental import pallas as pl
from jax.experimental.pallas import tpu as pltpu

LN_EPS = 1e-5  # PyTorch nn.LayerNorm default


def _erf_poly(x):
    # Abramowitz & Stegun 7.1.26 (|err| < 1.5e-7): exact (erf-based) GELU with
    # only mul/add/exp/reciprocal, all of which Mosaic lowers cleanly.
    p = 0.3275911
    a1, a2, a3, a4, a5 = (0.254829592, -0.284496736, 1.421413741,
                          -1.453152027, 1.061405429)
    s = jnp.where(x >= 0.0, 1.0, -1.0)
    ax = x * s
    t = pl.reciprocal(1.0 + p * ax, approx=True)       # EUP, not VPU divide
    poly = ((((a5 * t + a4) * t + a3) * t + a2) * t + a1) * t
    return s * (1.0 - poly * jnp.exp(-ax * ax))


def _gelu_exact(x):
    # nn.GELU default = exact erf GELU
    return 0.5 * x * (1.0 + _erf_poly(x * (2.0 ** -0.5)))


def _layernorm(x, g, b):
    mu = jnp.mean(x, axis=-1, keepdims=True)
    var = jnp.mean((x - mu) ** 2, axis=-1, keepdims=True)
    return (x - mu) * jax.lax.rsqrt(var + LN_EPS) * g + b


def cta_block_kernel(qk_scale_ref,
                     x_ref, ln1_g_ref, ln1_b_ref, w_qkv_ref,
                     w_proj_ref, b_proj_ref, ln2_g_ref, ln2_b_ref,
                     w_fc1_ref, b_fc1_ref, w_fc2_ref, b_fc2_ref,
                     o_ref, attn_scr, *, num_heads, head_dim):
    bt, n, c = x_ref.shape
    m = bt * n
    x = x_ref[...].reshape(m, c).astype(jnp.float32)      # (M, C)

    # ---------- attention branch: x + proj(softmax(q k^T * scale) v) ----------
    xn = _layernorm(x, ln1_g_ref[0], ln1_b_ref[0])
    qkv = jnp.dot(xn.astype(jnp.bfloat16), w_qkv_ref[...],
                  preferred_element_type=jnp.float32)     # (M, 3C) f32 acc

    qk_scale = qk_scale_ref[0, 0]                         # q_mask*k_mask*head_dim**-0.5
    q = (qkv[:, 0 * c:1 * c] * qk_scale).astype(jnp.bfloat16).reshape(bt, n, c)
    k = qkv[:, 1 * c:2 * c].astype(jnp.bfloat16).reshape(bt, n, c)
    v = qkv[:, 2 * c:3 * c].astype(jnp.bfloat16).reshape(bt, n, c)

    for h in range(num_heads):                            # static unroll, H is small
        sl = slice(h * head_dim, (h + 1) * head_dim)
        qh, kh, vh = q[:, :, sl], k[:, :, sl], v[:, :, sl]        # (Bt, N, D)
        s = jnp.einsum("bnd,bmd->bnm", qh, kh,
                       preferred_element_type=jnp.float32)        # (Bt, N, N)
        s = s - jnp.max(s, axis=-1, keepdims=True)
        e = jnp.exp(s)
        p = e * pl.reciprocal(jnp.sum(e, axis=-1, keepdims=True), approx=True)
        oh = jnp.einsum("bnm,bmd->bnd", p.astype(jnp.bfloat16), vh,
                        preferred_element_type=jnp.float32)       # (Bt, N, D)
        # write head output straight into the VMEM slab (no concatenate)
        attn_scr[:, h * head_dim:(h + 1) * head_dim] = oh.reshape(m, head_dim)

    attn_out = jnp.dot(attn_scr[...].astype(jnp.bfloat16), w_proj_ref[...],
                       preferred_element_type=jnp.float32) + b_proj_ref[0]
    x1 = x + attn_out

    # ---------- MLP branch: x1 + fc2(gelu(fc1(ln2(x1)))) ----------
    xn2 = _layernorm(x1, ln2_g_ref[0], ln2_b_ref[0])
    h1 = jnp.dot(xn2.astype(jnp.bfloat16), w_fc1_ref[...],
                 preferred_element_type=jnp.float32) + b_fc1_ref[0]
    h1 = _gelu_exact(h1)
    mlp = jnp.dot(h1.astype(jnp.bfloat16), w_fc2_ref[...],
                  preferred_element_type=jnp.float32) + b_fc2_ref[0]

    o_ref[...] = (x1 + mlp).reshape(bt, n, c).astype(o_ref.dtype)


def _pick_batch_tile(B, N, target_rows=256):
    """Largest divisor Bt of B with Bt*N <= target_rows (>=1)."""
    bt = 1
    for d in range(1, B + 1):
        if B % d == 0 and d * N <= target_rows:
            bt = d
    return bt


def cta_block(x, params, *, num_heads):
    B, N, C = x.shape
    head_dim = C // num_heads
    scale = head_dim ** -0.5
    hidden = params["w_fc1"].shape[1]

    Bt = _pick_batch_tile(B, N)

    # Fold the two scalar mask parameters and the attention scale into one scalar.
    qk_scale = jnp.reshape(params["q_mask"] * params["k_mask"] * scale,
                           (1, 1)).astype(jnp.float32)

    # bf16 MXU operands (f32 accumulation in-kernel); biases / LN params stay f32.
    w_qkv = params["w_qkv"].astype(jnp.bfloat16)
    w_proj = params["w_proj"].astype(jnp.bfloat16)
    w_fc1 = params["w_fc1"].astype(jnp.bfloat16)
    w_fc2 = params["w_fc2"].astype(jnp.bfloat16)

    kernel = functools.partial(cta_block_kernel, num_heads=num_heads,
                               head_dim=head_dim)

    full = lambda b: (0, 0)   # weights are grid-invariant
    grid_spec = pltpu.PrefetchScalarGridSpec(
        num_scalar_prefetch=0,
        grid=(B // Bt,),
        in_specs=[
            pl.BlockSpec(memory_space=pltpu.MemorySpace.SMEM),   # folded scalar (1,1)
            pl.BlockSpec((Bt, N, C), lambda b: (b, 0, 0)),       # x
            pl.BlockSpec((1, C), full),                          # ln1 gamma
            pl.BlockSpec((1, C), full),                          # ln1 beta
            pl.BlockSpec((C, 3 * C), full),                      # qkv weight (bf16)
            pl.BlockSpec((C, C), full),                          # proj weight (bf16)
            pl.BlockSpec((1, C), full),                          # proj bias
            pl.BlockSpec((1, C), full),                          # ln2 gamma
            pl.BlockSpec((1, C), full),                          # ln2 beta
            pl.BlockSpec((C, hidden), full),                     # fc1 weight (bf16)
            pl.BlockSpec((1, hidden), full),                     # fc1 bias
            pl.BlockSpec((hidden, C), full),                     # fc2 weight (bf16)
            pl.BlockSpec((1, C), full),                          # fc2 bias
        ],
        out_specs=pl.BlockSpec((Bt, N, C), lambda b: (b, 0, 0)),
        scratch_shapes=[pltpu.VMEM((Bt * N, C), jnp.float32)],   # attn head slab
    )
    return pl.pallas_call(
        kernel,
        out_shape=jax.ShapeDtypeStruct((B, N, C), x.dtype),
        grid_spec=grid_spec,
        compiler_params=pltpu.CompilerParams(dimension_semantics=("parallel",)),
    )(qk_scale, x,
      params["ln1_g"], params["ln1_b"], w_qkv,
      w_proj, params["b_proj"], params["ln2_g"], params["ln2_b"],
      w_fc1, params["b_fc1"], w_fc2, params["b_fc2"])


def reference(x, params, num_heads):
    """Pure-JAX (f32) replica of the PyTorch forward, for validation."""
    B, N, C = x.shape
    D = C // num_heads
    scale = D ** -0.5

    def ln(y, g, b):
        mu = y.mean(-1, keepdims=True)
        var = ((y - mu) ** 2).mean(-1, keepdims=True)
        return (y - mu) / jnp.sqrt(var + LN_EPS) * g + b

    xn = ln(x, params["ln1_g"][0], params["ln1_b"][0])
    qkv = (xn @ params["w_qkv"]).reshape(B, N, 3, num_heads, D).transpose(2, 0, 3, 1, 4)
    q, k, v = qkv[0], qkv[1], qkv[2]                   # (B, H, N, D)
    q = q * params["q_mask"][0, 0]
    k = k * params["k_mask"][0, 0]
    attn = jnp.einsum("bhnd,bhmd->bhnm", q, k) * scale
    attn = jax.nn.softmax(attn, axis=-1)
    out = jnp.einsum("bhnm,bhmd->bhnd", attn, v)
    out = out.transpose(0, 2, 1, 3).reshape(B, N, C)
    out = out @ params["w_proj"] + params["b_proj"][0]
    x1 = x + out
    xn2 = ln(x1, params["ln2_g"][0], params["ln2_b"][0])
    h = jax.nn.gelu(xn2 @ params["w_fc1"] + params["b_fc1"][0], approximate=False)
    return x1 + (h @ params["w_fc2"] + params["b_fc2"][0])


if __name__ == "__main__":
    B, N, C = 2, 8, 32
    num_heads = 4
    hidden = int(C * 4.0)

    key = jax.random.PRNGKey(0)
    ks = jax.random.split(key, 8)

    def lin_init(k, fan_in, shape):
        bound = 1.0 / (fan_in ** 0.5)
        return jax.random.uniform(k, shape, jnp.float32, -bound, bound)

    params = dict(
        ln1_g=jnp.ones((1, C), jnp.float32),
        ln1_b=jnp.zeros((1, C), jnp.float32),
        w_qkv=lin_init(ks[0], C, (C, 3 * C)),          # qkv_bias=False
        w_proj=lin_init(ks[1], C, (C, C)),
        b_proj=lin_init(ks[2], C, (1, C)),
        ln2_g=jnp.ones((1, C), jnp.float32),
        ln2_b=jnp.zeros((1, C), jnp.float32),
        w_fc1=lin_init(ks[3], C, (C, hidden)),
        b_fc1=lin_init(ks[4], C, (1, hidden)),
        w_fc2=lin_init(ks[5], hidden, (hidden, C)),
        b_fc2=lin_init(ks[6], hidden, (1, C)),
        q_mask=jnp.ones((1, 1), jnp.float32),          # nn.Parameter(torch.ones(1,1,1))
        k_mask=jnp.ones((1, 1), jnp.float32),
    )
    x = jax.random.normal(ks[7], (B, N, C), jnp.float32)

    out = jax.block_until_ready(cta_block(x, params, num_heads=num_heads))
    ref = reference(x, params, num_heads)

    assert out.shape == (B, N, C)
    err = float(jnp.max(jnp.abs(out - ref)))
    assert err < 5e-2, f"max abs err too large: {err}"
    print("KERNEL_OK")
</pallas_src>

<mosaic_0001>
module attributes {stable_mosaic.version = 11 : i64} {
  func.func @cta_block_kernel(%arg0: i32, %arg1: memref<1x1xf32, #tpu.memory_space<smem>>, %arg2: memref<2x8x32xf32, #tpu.memory_space<vmem>>, %arg3: memref<1x32xf32, #tpu.memory_space<vmem>>, %arg4: memref<1x32xf32, #tpu.memory_space<vmem>>, %arg5: memref<32x96xbf16, #tpu.memory_space<vmem>>, %arg6: memref<32x32xbf16, #tpu.memory_space<vmem>>, %arg7: memref<1x32xf32, #tpu.memory_space<vmem>>, %arg8: memref<1x32xf32, #tpu.memory_space<vmem>>, %arg9: memref<1x32xf32, #tpu.memory_space<vmem>>, %arg10: memref<32x128xbf16, #tpu.memory_space<vmem>>, %arg11: memref<1x128xf32, #tpu.memory_space<vmem>>, %arg12: memref<128x32xbf16, #tpu.memory_space<vmem>>, %arg13: memref<1x32xf32, #tpu.memory_space<vmem>>, %arg14: memref<2x8x32xf32, #tpu.memory_space<vmem>>, %arg15: memref<16x32xf32, #tpu.memory_space<vmem>>) attributes {dimension_semantics = [#tpu.dimension_semantics<parallel>], iteration_bounds = array<i64: 1>, scalar_prefetch = 0 : i64, scratch_operands = 1 : i64, tpu.core_type = #tpu.core_type<tc>, window_params = [{transform_indices = @transform_0, window_bounds = array<i64: 1, 1>}, {transform_indices = @transform_1, window_bounds = array<i64: 2, 8, 32>}, {pipeline_mode = #tpu.pipeline_mode<synchronous>, transform_indices = @transform_2, window_bounds = array<i64: 1, 32>}, {pipeline_mode = #tpu.pipeline_mode<synchronous>, transform_indices = @transform_3, window_bounds = array<i64: 1, 32>}, {pipeline_mode = #tpu.pipeline_mode<synchronous>, transform_indices = @transform_4, window_bounds = array<i64: 32, 96>}, {pipeline_mode = #tpu.pipeline_mode<synchronous>, transform_indices = @transform_5, window_bounds = array<i64: 32, 32>}, {pipeline_mode = #tpu.pipeline_mode<synchronous>, transform_indices = @transform_6, window_bounds = array<i64: 1, 32>}, {pipeline_mode = #tpu.pipeline_mode<synchronous>, transform_indices = @transform_7, window_bounds = array<i64: 1, 32>}, {pipeline_mode = #tpu.pipeline_mode<synchronous>, transform_indices = @transform_8, window_bounds = array<i64: 1, 32>}, {pipeline_mode = #tpu.pipeline_mode<synchronous>, transform_indices = @transform_9, window_bounds = array<i64: 32, 128>}, {pipeline_mode = #tpu.pipeline_mode<synchronous>, transform_indices = @transform_10, window_bounds = array<i64: 1, 128>}, {pipeline_mode = #tpu.pipeline_mode<synchronous>, transform_indices = @transform_11, window_bounds = array<i64: 128, 32>}, {pipeline_mode = #tpu.pipeline_mode<synchronous>, transform_indices = @transform_12, window_bounds = array<i64: 1, 32>}, {transform_indices = @transform_13, window_bounds = array<i64: 2, 8, 32>}]} {
    %c0 = arith.constant 0 : index
    %c0_0 = arith.constant 0 : index
    %c0_1 = arith.constant 0 : index
    %0 = vector.load %arg2[%c0, %c0_0, %c0_1] : memref<2x8x32xf32, #tpu.memory_space<vmem>>, vector<2x8x32xf32>
    %1 = vector.shape_cast %0 : vector<2x8x32xf32> to vector<16x32xf32>
    %c0_2 = arith.constant 0 : index
    %c0_3 = arith.constant 0 : index
    %2 = vector.load %arg3[%c0_2, %c0_3] : memref<1x32xf32, #tpu.memory_space<vmem>>, vector<1x32xf32>
    %3 = vector.shape_cast %2 : vector<1x32xf32> to vector<32xf32>
    %c0_4 = arith.constant 0 : index
    %c0_5 = arith.constant 0 : index
    %4 = vector.load %arg4[%c0_4, %c0_5] : memref<1x32xf32, #tpu.memory_space<vmem>>, vector<1x32xf32>
    %5 = vector.shape_cast %4 : vector<1x32xf32> to vector<32xf32>
    %cst = arith.constant dense<0.000000e+00> : vector<16xf32>
    %6 = vector.multi_reduction <add>, %1, %cst [1] : vector<16x32xf32> to vector<16xf32>
    %7 = vector.shape_cast %6 : vector<16xf32> to vector<16x1xf32>
    %cst_6 = arith.constant 3.200000e+01 : f32
    %8 = vector.broadcast %cst_6 : f32 to vector<16x1xf32>
    %9 = arith.divf %7, %8 : vector<16x1xf32>
    %10 = vector.broadcast %9 : vector<16x1xf32> to vector<16x32xf32>
    %11 = arith.subf %1, %10 : vector<16x32xf32>
    %12 = arith.mulf %11, %11 : vector<16x32xf32>
    %cst_7 = arith.constant dense<0.000000e+00> : vector<16xf32>
    %13 = vector.multi_reduction <add>, %12, %cst_7 [1] : vector<16x32xf32> to vector<16xf32>
    %14 = vector.shape_cast %13 : vector<16xf32> to vector<16x1xf32>
    %cst_8 = arith.constant 3.200000e+01 : f32
    %15 = vector.broadcast %cst_8 : f32 to vector<16x1xf32>
    %16 = arith.divf %14, %15 : vector<16x1xf32>
    %17 = vector.broadcast %9 : vector<16x1xf32> to vector<16x32xf32>
    %18 = arith.subf %1, %17 : vector<16x32xf32>
    %cst_9 = arith.constant 9.99999974E-6 : f32
    %19 = vector.broadcast %cst_9 : f32 to vector<16x1xf32>
    %20 = arith.addf %16, %19 : vector<16x1xf32>
    %21 = math.rsqrt %20 : vector<16x1xf32>
    %22 = vector.broadcast %21 : vector<16x1xf32> to vector<16x32xf32>
    %23 = arith.mulf %18, %22 : vector<16x32xf32>
    %24 = vector.shape_cast %3 : vector<32xf32> to vector<1x32xf32>
    %25 = vector.broadcast %24 : vector<1x32xf32> to vector<16x32xf32>
    %26 = arith.mulf %23, %25 : vector<16x32xf32>
    %27 = vector.shape_cast %5 : vector<32xf32> to vector<1x32xf32>
    %28 = vector.broadcast %27 : vector<1x32xf32> to vector<16x32xf32>
    %29 = arith.addf %26, %28 : vector<16x32xf32>
    %30 = arith.truncf %29 : vector<16x32xf32> to vector<16x32xbf16>
    %c0_10 = arith.constant 0 : index
    %c0_11 = arith.constant 0 : index
    %31 = vector.load %arg5[%c0_10, %c0_11] : memref<32x96xbf16, #tpu.memory_space<vmem>>, vector<32x96xbf16>
    %cst_12 = arith.constant dense<0.000000e+00> : vector<16x96xf32>
    %32 = tpu.matmul %30, %31, %cst_12 {dimension_numbers = #tpu.dot_dimension_numbers<[1], [0], [0], [1], [0, 0, 1, 1], [], []>} : vector<16x32xbf16>, vector<32x96xbf16>, vector<16x96xf32> -> vector<16x96xf32>
    %c0_13 = arith.constant 0 : index
    %c0_14 = arith.constant 0 : index
    %33 = memref.load %arg1[%c0_13, %c0_14] : memref<1x1xf32, #tpu.memory_space<smem>>
    %34 = vector.extract_strided_slice %32 {offsets = [0, 0], sizes = [16, 32], strides = [1, 1]} : vector<16x96xf32> to vector<16x32xf32>
    %35 = vector.broadcast %33 : f32 to vector<16x32xf32>
    %36 = arith.mulf %34, %35 : vector<16x32xf32>
    %37 = arith.truncf %36 : vector<16x32xf32> to vector<16x32xbf16>
    %38 = vector.shape_cast %37 : vector<16x32xbf16> to vector<2x8x32xbf16>
    %39 = vector.extract_strided_slice %32 {offsets = [0, 32], sizes = [16, 32], strides = [1, 1]} : vector<16x96xf32> to vector<16x32xf32>
    %40 = arith.truncf %39 : vector<16x32xf32> to vector<16x32xbf16>
    %41 = vector.shape_cast %40 : vector<16x32xbf16> to vector<2x8x32xbf16>
    %42 = vector.extract_strided_slice %32 {offsets = [0, 64], sizes = [16, 32], strides = [1, 1]} : vector<16x96xf32> to vector<16x32xf32>
    %43 = arith.truncf %42 : vector<16x32xf32> to vector<16x32xbf16>
    %44 = vector.shape_cast %43 : vector<16x32xbf16> to vector<2x8x32xbf16>
    %45 = vector.extract_strided_slice %38 {offsets = [0, 0, 0], sizes = [2, 8, 8], strides = [1, 1, 1]} : vector<2x8x32xbf16> to vector<2x8x8xbf16>
    %46 = vector.extract_strided_slice %41 {offsets = [0, 0, 0], sizes = [2, 8, 8], strides = [1, 1, 1]} : vector<2x8x32xbf16> to vector<2x8x8xbf16>
    %47 = vector.extract_strided_slice %44 {offsets = [0, 0, 0], sizes = [2, 8, 8], strides = [1, 1, 1]} : vector<2x8x32xbf16> to vector<2x8x8xbf16>
    "tpu.trace_start"() <{level = 10 : i32, message = "bnd,bmd->bnm"}> : () -> ()
    %cst_15 = arith.constant dense<0.000000e+00> : vector<2x8x8xf32>
    %48 = tpu.matmul %45, %46, %cst_15 {dimension_numbers = #tpu.dot_dimension_numbers<[2], [2], [1], [1], [0, 0, 0, 1, 1, 1], [0], [0]>} : vector<2x8x8xbf16>, vector<2x8x8xbf16>, vector<2x8x8xf32> -> vector<2x8x8xf32>
    "tpu.trace_stop"() : () -> ()
    %cst_16 = arith.constant dense<0xFF800000> : vector<2x8xf32>
    %49 = vector.multi_reduction <maximumf>, %48, %cst_16 [2] : vector<2x8x8xf32> to vector<2x8xf32>
    %50 = vector.shape_cast %49 : vector<2x8xf32> to vector<2x8x1xf32>
    %51 = vector.broadcast %50 : vector<2x8x1xf32> to vector<2x8x8xf32>
    %52 = arith.subf %48, %51 : vector<2x8x8xf32>
    %53 = math.exp %52 : vector<2x8x8xf32>
    %cst_17 = arith.constant dense<0.000000e+00> : vector<2x8xf32>
    %54 = vector.multi_reduction <add>, %53, %cst_17 [2] : vector<2x8x8xf32> to vector<2x8xf32>
    %55 = vector.shape_cast %54 : vector<2x8xf32> to vector<2x8x1xf32>
    %56 = tpu.reciprocal %55 {approx = true} : vector<2x8x1xf32> -> vector<2x8x1xf32>
    %57 = vector.broadcast %56 : vector<2x8x1xf32> to vector<2x8x8xf32>
    %58 = arith.mulf %53, %57 : vector<2x8x8xf32>
    %59 = arith.truncf %58 : vector<2x8x8xf32> to vector<2x8x8xbf16>
    "tpu.trace_start"() <{level = 10 : i32, message = "bnm,bmd->bnd"}> : () -> ()
    %cst_18 = arith.constant dense<0.000000e+00> : vector<2x8x8xf32>
    %60 = tpu.matmul %59, %47, %cst_18 {dimension_numbers = #tpu.dot_dimension_numbers<[2], [1], [1], [2], [0, 0, 0, 1, 1, 2], [0], [0]>} : vector<2x8x8xbf16>, vector<2x8x8xbf16>, vector<2x8x8xf32> -> vector<2x8x8xf32>
    "tpu.trace_stop"() : () -> ()
    %61 = vector.shape_cast %60 : vector<2x8x8xf32> to vector<16x8xf32>
    %c0_19 = arith.constant 0 : index
    %c0_20 = arith.constant 0 : index
    %62 = vector.load %arg15[%c0_19, %c0_20] : memref<16x32xf32, #tpu.memory_space<vmem>>, vector<16x8xf32>
    tpu.vector_store %arg15[%c0_19, %c0_20], %61 {strides = array<i32>} : memref<16x32xf32, #tpu.memory_space<vmem>>, vector<16x8xf32>,
    %63 = vector.extract_strided_slice %38 {offsets = [0, 0, 8], sizes = [2, 8, 8], strides = [1, 1, 1]} : vector<2x8x32xbf16> to vector<2x8x8xbf16>
    %64 = vector.extract_strided_slice %41 {offsets = [0, 0, 8], sizes = [2, 8, 8], strides = [1, 1, 1]} : vector<2x8x32xbf16> to vector<2x8x8xbf16>
    %65 = vector.extract_strided_slice %44 {offsets = [0, 0, 8], sizes = [2, 8, 8], strides = [1, 1, 1]} : vector<2x8x32xbf16> to vector<2x8x8xbf16>
    "tpu.trace_start"() <{level = 10 : i32, message = "bnd,bmd->bnm"}> : () -> ()
    %cst_21 = arith.constant dense<0.000000e+00> : vector<2x8x8xf32>
    %66 = tpu.matmul %63, %64, %cst_21 {dimension_numbers = #tpu.dot_dimension_numbers<[2], [2], [1], [1], [0, 0, 0, 1, 1, 1], [0], [0]>} : vector<2x8x8xbf16>, vector<2x8x8xbf16>, vector<2x8x8xf32> -> vector<2x8x8xf32>
    "tpu.trace_stop"() : () -> ()
    %cst_22 = arith.constant dense<0xFF800000> : vector<2x8xf32>
    %67 = vector.multi_reduction <maximumf>, %66, %cst_22 [2] : vector<2x8x8xf32> to vector<2x8xf32>
    %68 = vector.shape_cast %67 : vector<2x8xf32> to vector<2x8x1xf32>
    %69 = vector.broadcast %68 : vector<2x8x1xf32> to vector<2x8x8xf32>
    %70 = arith.subf %66, %69 : vector<2x8x8xf32>
    %71 = math.exp %70 : vector<2x8x8xf32>
    %cst_23 = arith.constant dense<0.000000e+00> : vector<2x8xf32>
    %72 = vector.multi_reduction <add>, %71, %cst_23 [2] : vector<2x8x8xf32> to vector<2x8xf32>
    %73 = vector.shape_cast %72 : vector<2x8xf32> to vector<2x8x1xf32>
    %74 = tpu.reciprocal %73 {approx = true} : vector<2x8x1xf32> -> vector<2x8x1xf32>
    %75 = vector.broadcast %74 : vector<2x8x1xf32> to vector<2x8x8xf32>
    %76 = arith.mulf %71, %75 : vector<2x8x8xf32>
    %77 = arith.truncf %76 : vector<2x8x8xf32> to vector<2x8x8xbf16>
    "tpu.trace_start"() <{level = 10 : i32, message = "bnm,bmd->bnd"}> : () -> ()
    %cst_24 = arith.constant dense<0.000000e+00> : vector<2x8x8xf32>
    %78 = tpu.matmul %77, %65, %cst_24 {dimension_numbers = #tpu.dot_dimension_numbers<[2], [1], [1], [2], [0, 0, 0, 1, 1, 2], [0], [0]>} : vector<2x8x8xbf16>, vector<2x8x8xbf16>, vector<2x8x8xf32> -> vector<2x8x8xf32>
    "tpu.trace_stop"() : () -> ()
    %79 = vector.shape_cast %78 : vector<2x8x8xf32> to vector<16x8xf32>
    %c0_25 = arith.constant 0 : index
    %c8 = arith.constant 8 : index
    %80 = vector.load %arg15[%c0_25, %c8] : memref<16x32xf32, #tpu.memory_space<vmem>>, vector<16x8xf32>
    tpu.vector_store %arg15[%c0_25, %c8], %79 {strides = array<i32>} : memref<16x32xf32, #tpu.memory_space<vmem>>, vector<16x8xf32>,
    %81 = vector.extract_strided_slice %38 {offsets = [0, 0, 16], sizes = [2, 8, 8], strides = [1, 1, 1]} : vector<2x8x32xbf16> to vector<2x8x8xbf16>
    %82 = vector.extract_strided_slice %41 {offsets = [0, 0, 16], sizes = [2, 8, 8], strides = [1, 1, 1]} : vector<2x8x32xbf16> to vector<2x8x8xbf16>
    %83 = vector.extract_strided_slice %44 {offsets = [0, 0, 16], sizes = [2, 8, 8], strides = [1, 1, 1]} : vector<2x8x32xbf16> to vector<2x8x8xbf16>
    "tpu.trace_start"() <{level = 10 : i32, message = "bnd,bmd->bnm"}> : () -> ()
    %cst_26 = arith.constant dense<0.000000e+00> : vector<2x8x8xf32>
    %84 = tpu.matmul %81, %82, %cst_26 {dimension_numbers = #tpu.dot_dimension_numbers<[2], [2], [1], [1], [0, 0, 0, 1, 1, 1], [0], [0]>} : vector<2x8x8xbf16>, vector<2x8x8xbf16>, vector<2x8x8xf32> -> vector<2x8x8xf32>
    "tpu.trace_stop"() : () -> ()
    %cst_27 = arith.constant dense<0xFF800000> : vector<2x8xf32>
    %85 = vector.multi_reduction <maximumf>, %84, %cst_27 [2] : vector<2x8x8xf32> to vector<2x8xf32>
    %86 = vector.shape_cast %85 : vector<2x8xf32> to vector<2x8x1xf32>
    %87 = vector.broadcast %86 : vector<2x8x1xf32> to vector<2x8x8xf32>
    %88 = arith.subf %84, %87 : vector<2x8x8xf32>
    %89 = math.exp %88 : vector<2x8x8xf32>
    %cst_28 = arith.constant dense<0.000000e+00> : vector<2x8xf32>
    %90 = vector.multi_reduction <add>, %89, %cst_28 [2] : vector<2x8x8xf32> to vector<2x8xf32>
    %91 = vector.shape_cast %90 : vector<2x8xf32> to vector<2x8x1xf32>
    %92 = tpu.reciprocal %91 {approx = true} : vector<2x8x1xf32> -> vector<2x8x1xf32>
    %93 = vector.broadcast %92 : vector<2x8x1xf32> to vector<2x8x8xf32>
    %94 = arith.mulf %89, %93 : vector<2x8x8xf32>
    %95 = arith.truncf %94 : vector<2x8x8xf32> to vector<2x8x8xbf16>
    "tpu.trace_start"() <{level = 10 : i32, message = "bnm,bmd->bnd"}> : () -> ()
    %cst_29 = arith.constant dense<0.000000e+00> : vector<2x8x8xf32>
    %96 = tpu.matmul %95, %83, %cst_29 {dimension_numbers = #tpu.dot_dimension_numbers<[2], [1], [1], [2], [0, 0, 0, 1, 1, 2], [0], [0]>} : vector<2x8x8xbf16>, vector<2x8x8xbf16>, vector<2x8x8xf32> -> vector<2x8x8xf32>
    "tpu.trace_stop"() : () -> ()
    %97 = vector.shape_cast %96 : vector<2x8x8xf32> to vector<16x8xf32>
    %c0_30 = arith.constant 0 : index
    %c16 = arith.constant 16 : index
    %98 = vector.load %arg15[%c0_30, %c16] : memref<16x32xf32, #tpu.memory_space<vmem>>, vector<16x8xf32>
    tpu.vector_store %arg15[%c0_30, %c16], %97 {strides = array<i32>} : memref<16x32xf32, #tpu.memory_space<vmem>>, vector<16x8xf32>,
    %99 = vector.extract_strided_slice %38 {offsets = [0, 0, 24], sizes = [2, 8, 8], strides = [1, 1, 1]} : vector<2x8x32xbf16> to vector<2x8x8xbf16>
    %100 = vector.extract_strided_slice %41 {offsets = [0, 0, 24], sizes = [2, 8, 8], strides = [1, 1, 1]} : vector<2x8x32xbf16> to vector<2x8x8xbf16>
    %101 = vector.extract_strided_slice %44 {offsets = [0, 0, 24], sizes = [2, 8, 8], strides = [1, 1, 1]} : vector<2x8x32xbf16> to vector<2x8x8xbf16>
    "tpu.trace_start"() <{level = 10 : i32, message = "bnd,bmd->bnm"}> : () -> ()
    %cst_31 = arith.constant dense<0.000000e+00> : vector<2x8x8xf32>
    %102 = tpu.matmul %99, %100, %cst_31 {dimension_numbers = #tpu.dot_dimension_numbers<[2], [2], [1], [1], [0, 0, 0, 1, 1, 1], [0], [0]>} : vector<2x8x8xbf16>, vector<2x8x8xbf16>, vector<2x8x8xf32> -> vector<2x8x8xf32>
    "tpu.trace_stop"() : () -> ()
    %cst_32 = arith.constant dense<0xFF800000> : vector<2x8xf32>
    %103 = vector.multi_reduction <maximumf>, %102, %cst_32 [2] : vector<2x8x8xf32> to vector<2x8xf32>
    %104 = vector.shape_cast %103 : vector<2x8xf32> to vector<2x8x1xf32>
    %105 = vector.broadcast %104 : vector<2x8x1xf32> to vector<2x8x8xf32>
    %106 = arith.subf %102, %105 : vector<2x8x8xf32>
    %107 = math.exp %106 : vector<2x8x8xf32>
    %cst_33 = arith.constant dense<0.000000e+00> : vector<2x8xf32>
    %108 = vector.multi_reduction <add>, %107, %cst_33 [2] : vector<2x8x8xf32> to vector<2x8xf32>
    %109 = vector.shape_cast %108 : vector<2x8xf32> to vector<2x8x1xf32>
    %110 = tpu.reciprocal %109 {approx = true} : vector<2x8x1xf32> -> vector<2x8x1xf32>
    %111 = vector.broadcast %110 : vector<2x8x1xf32> to vector<2x8x8xf32>
    %112 = arith.mulf %107, %111 : vector<2x8x8xf32>
    %113 = arith.truncf %112 : vector<2x8x8xf32> to vector<2x8x8xbf16>
    "tpu.trace_start"() <{level = 10 : i32, message = "bnm,bmd->bnd"}> : () -> ()
    %cst_34 = arith.constant dense<0.000000e+00> : vector<2x8x8xf32>
    %114 = tpu.matmul %113, %101, %cst_34 {dimension_numbers = #tpu.dot_dimension_numbers<[2], [1], [1], [2], [0, 0, 0, 1, 1, 2], [0], [0]>} : vector<2x8x8xbf16>, vector<2x8x8xbf16>, vector<2x8x8xf32> -> vector<2x8x8xf32>
    "tpu.trace_stop"() : () -> ()
    %115 = vector.shape_cast %114 : vector<2x8x8xf32> to vector<16x8xf32>
    %c0_35 = arith.constant 0 : index
    %c24 = arith.constant 24 : index
    %116 = vector.load %arg15[%c0_35, %c24] : memref<16x32xf32, #tpu.memory_space<vmem>>, vector<16x8xf32>
    tpu.vector_store %arg15[%c0_35, %c24], %115 {strides = array<i32>} : memref<16x32xf32, #tpu.memory_space<vmem>>, vector<16x8xf32>,
    %c0_36 = arith.constant 0 : index
    %c0_37 = arith.constant 0 : index
    %117 = vector.load %arg15[%c0_36, %c0_37] : memref<16x32xf32, #tpu.memory_space<vmem>>, vector<16x32xf32>
    %118 = arith.truncf %117 : vector<16x32xf32> to vector<16x32xbf16>
    %c0_38 = arith.constant 0 : index
    %c0_39 = arith.constant 0 : index
    %119 = vector.load %arg6[%c0_38, %c0_39] : memref<32x32xbf16, #tpu.memory_space<vmem>>, vector<32x32xbf16>
    %cst_40 = arith.constant dense<0.000000e+00> : vector<16x32xf32>
    %120 = tpu.matmul %118, %119, %cst_40 {dimension_numbers = #tpu.dot_dimension_numbers<[1], [0], [0], [1], [0, 0, 1, 1], [], []>} : vector<16x32xbf16>, vector<32x32xbf16>, vector<16x32xf32> -> vector<16x32xf32>
    %c0_41 = arith.constant 0 : index
    %c0_42 = arith.constant 0 : index
    %121 = vector.load %arg7[%c0_41, %c0_42] : memref<1x32xf32, #tpu.memory_space<vmem>>, vector<1x32xf32>
    %122 = vector.shape_cast %121 : vector<1x32xf32> to vector<32xf32>
    %123 = vector.shape_cast %122 : vector<32xf32> to vector<1x32xf32>
    %124 = vector.broadcast %123 : vector<1x32xf32> to vector<16x32xf32>
    %125 = arith.addf %120, %124 : vector<16x32xf32>
    %126 = arith.addf %1, %125 : vector<16x32xf32>
    %c0_43 = arith.constant 0 : index
    %c0_44 = arith.constant 0 : index
    %127 = vector.load %arg8[%c0_43, %c0_44] : memref<1x32xf32, #tpu.memory_space<vmem>>, vector<1x32xf32>
    %128 = vector.shape_cast %127 : vector<1x32xf32> to vector<32xf32>
    %c0_45 = arith.constant 0 : index
    %c0_46 = arith.constant 0 : index
    %129 = vector.load %arg9[%c0_45, %c0_46] : memref<1x32xf32, #tpu.memory_space<vmem>>, vector<1x32xf32>
    %130 = vector.shape_cast %129 : vector<1x32xf32> to vector<32xf32>
    %cst_47 = arith.constant dense<0.000000e+00> : vector<16xf32>
    %131 = vector.multi_reduction <add>, %126, %cst_47 [1] : vector<16x32xf32> to vector<16xf32>
    %132 = vector.shape_cast %131 : vector<16xf32> to vector<16x1xf32>
    %cst_48 = arith.constant 3.200000e+01 : f32
    %133 = vector.broadcast %cst_48 : f32 to vector<16x1xf32>
    %134 = arith.divf %132, %133 : vector<16x1xf32>
    %135 = vector.broadcast %134 : vector<16x1xf32> to vector<16x32xf32>
    %136 = arith.subf %126, %135 : vector<16x32xf32>
    %137 = arith.mulf %136, %136 : vector<16x32xf32>
    %cst_49 = arith.constant dense<0.000000e+00> : vector<16xf32>
    %138 = vector.multi_reduction <add>, %137, %cst_49 [1] : vector<16x32xf32> to vector<16xf32>
    %139 = vector.shape_cast %138 : vector<16xf32> to vector<16x1xf32>
    %cst_50 = arith.constant 3.200000e+01 : f32
    %140 = vector.broadcast %cst_50 : f32 to vector<16x1xf32>
    %141 = arith.divf %139, %140 : vector<16x1xf32>
    %142 = vector.broadcast %134 : vector<16x1xf32> to vector<16x32xf32>
    %143 = arith.subf %126, %142 : vector<16x32xf32>
    %cst_51 = arith.constant 9.99999974E-6 : f32
    %144 = vector.broadcast %cst_51 : f32 to vector<16x1xf32>
    %145 = arith.addf %141, %144 : vector<16x1xf32>
    %146 = math.rsqrt %145 : vector<16x1xf32>
    %147 = vector.broadcast %146 : vector<16x1xf32> to vector<16x32xf32>
    %148 = arith.mulf %143, %147 : vector<16x32xf32>
    %149 = vector.shape_cast %128 : vector<32xf32> to vector<1x32xf32>
    %150 = vector.broadcast %149 : vector<1x32xf32> to vector<16x32xf32>
    %151 = arith.mulf %148, %150 : vector<16x32xf32>
    %152 = vector.shape_cast %130 : vector<32xf32> to vector<1x32xf32>
    %153 = vector.broadcast %152 : vector<1x32xf32> to vector<16x32xf32>
    %154 = arith.addf %151, %153 : vector<16x32xf32>
    %155 = arith.truncf %154 : vector<16x32xf32> to vector<16x32xbf16>
    %c0_52 = arith.constant 0 : index
    %c0_53 = arith.constant 0 : index
    %156 = vector.load %arg10[%c0_52, %c0_53] : memref<32x128xbf16, #tpu.memory_space<vmem>>, vector<32x128xbf16>
    %cst_54 = arith.constant dense<0.000000e+00> : vector<16x128xf32>
    %157 = tpu.matmul %155, %156, %cst_54 {dimension_numbers = #tpu.dot_dimension_numbers<[1], [0], [0], [1], [0, 0, 1, 1], [], []>} : vector<16x32xbf16>, vector<32x128xbf16>, vector<16x128xf32> -> vector<16x128xf32>
    %c0_55 = arith.constant 0 : index
    %c0_56 = arith.constant 0 : index
    %158 = vector.load %arg11[%c0_55, %c0_56] : memref<1x128xf32, #tpu.memory_space<vmem>>, vector<1x128xf32>
    %159 = vector.shape_cast %158 : vector<1x128xf32> to vector<128xf32>
    %160 = vector.shape_cast %159 : vector<128xf32> to vector<1x128xf32>
    %161 = vector.broadcast %160 : vector<1x128xf32> to vector<16x128xf32>
    %162 = arith.addf %157, %161 : vector<16x128xf32>
    %cst_57 = arith.constant 5.000000e-01 : f32
    %163 = vector.broadcast %cst_57 : f32 to vector<16x128xf32>
    %164 = arith.mulf %163, %162 : vector<16x128xf32>
    %cst_58 = arith.constant 0.707106769 : f32
    %165 = vector.broadcast %cst_58 : f32 to vector<16x128xf32>
    %166 = arith.mulf %162, %165 : vector<16x128xf32>
    %cst_59 = arith.constant 0.000000e+00 : f32
    %167 = vector.broadcast %cst_59 : f32 to vector<16x128xf32>
    %168 = arith.cmpf oge, %166, %167 : vector<16x128xf32>
    %cst_60 = arith.constant 1.000000e+00 : f32
    %cst_61 = arith.constant -1.000000e+00 : f32
    %169 = vector.broadcast %cst_60 : f32 to vector<16x128xf32>
    %170 = vector.broadcast %cst_61 : f32 to vector<16x128xf32>
    %171 = arith.select %168, %169, %170 : vector<16x128xi1>, vector<16x128xf32>
    %172 = arith.mulf %166, %171 : vector<16x128xf32>
    %cst_62 = arith.constant 0.327591091 : f32
    %173 = vector.broadcast %cst_62 : f32 to vector<16x128xf32>
    %174 = arith.mulf %173, %172 : vector<16x128xf32>
    %cst_63 = arith.constant 1.000000e+00 : f32
    %175 = vector.broadcast %cst_63 : f32 to vector<16x128xf32>
    %176 = arith.addf %175, %174 : vector<16x128xf32>
    %177 = tpu.reciprocal %176 {approx = true} : vector<16x128xf32> -> vector<16x128xf32>
    %cst_64 = arith.constant 1.06140542 : f32
    %178 = vector.broadcast %cst_64 : f32 to vector<16x128xf32>
    %179 = arith.mulf %178, %177 : vector<16x128xf32>
    %cst_65 = arith.constant -1.45315206 : f32
    %180 = vector.broadcast %cst_65 : f32 to vector<16x128xf32>
    %181 = arith.addf %179, %180 : vector<16x128xf32>
    %182 = arith.mulf %181, %177 : vector<16x128xf32>
    %cst_66 = arith.constant 1.42141378 : f32
    %183 = vector.broadcast %cst_66 : f32 to vector<16x128xf32>
    %184 = arith.addf %182, %183 : vector<16x128xf32>
    %185 = arith.mulf %184, %177 : vector<16x128xf32>
    %cst_67 = arith.constant -0.284496725 : f32
    %186 = vector.broadcast %cst_67 : f32 to vector<16x128xf32>
    %187 = arith.addf %185, %186 : vector<16x128xf32>
    %188 = arith.mulf %187, %177 : vector<16x128xf32>
    %cst_68 = arith.constant 0.254829586 : f32
    %189 = vector.broadcast %cst_68 : f32 to vector<16x128xf32>
    %190 = arith.addf %188, %189 : vector<16x128xf32>
    %191 = arith.mulf %190, %177 : vector<16x128xf32>
    %cst_69 = arith.constant 0.000000e+00 : f32
    %192 = vector.broadcast %cst_69 : f32 to vector<16x128xf32>
    %193 = arith.subf %192, %172 : vector<16x128xf32>
    %194 = arith.mulf %193, %172 : vector<16x128xf32>
    %195 = math.exp %194 : vector<16x128xf32>
    %196 = arith.mulf %191, %195 : vector<16x128xf32>
    %cst_70 = arith.constant 1.000000e+00 : f32
    %197 = vector.broadcast %cst_70 : f32 to vector<16x128xf32>
    %198 = arith.subf %197, %196 : vector<16x128xf32>
    %199 = arith.mulf %171, %198 : vector<16x128xf32>
    %cst_71 = arith.constant 1.000000e+00 : f32
    %200 = vector.broadcast %cst_71 : f32 to vector<16x128xf32>
    %201 = arith.addf %200, %199 : vector<16x128xf32>
    %202 = arith.mulf %164, %201 : vector<16x128xf32>
    %203 = arith.truncf %202 : vector<16x128xf32> to vector<16x128xbf16>
    %c0_72 = arith.constant 0 : index
    %c0_73 = arith.constant 0 : index
    %204 = vector.load %arg12[%c0_72, %c0_73] : memref<128x32xbf16, #tpu.memory_space<vmem>>, vector<128x32xbf16>
    %cst_74 = arith.constant dense<0.000000e+00> : vector<16x32xf32>
    %205 = tpu.matmul %203, %204, %cst_74 {dimension_numbers = #tpu.dot_dimension_numbers<[1], [0], [0], [1], [0, 0, 1, 1], [], []>} : vector<16x128xbf16>, vector<128x32xbf16>, vector<16x32xf32> -> vector<16x32xf32>
    %c0_75 = arith.constant 0 : index
    %c0_76 = arith.constant 0 : index
    %206 = vector.load %arg13[%c0_75, %c0_76] : memref<1x32xf32, #tpu.memory_space<vmem>>, vector<1x32xf32>
    %207 = vector.shape_cast %206 : vector<1x32xf32> to vector<32xf32>
    %208 = vector.shape_cast %207 : vector<32xf32> to vector<1x32xf32>
    %209 = vector.broadcast %208 : vector<1x32xf32> to vector<16x32xf32>
    %210 = arith.addf %205, %209 : vector<16x32xf32>
    %211 = arith.addf %126, %210 : vector<16x32xf32>
    %212 = vector.shape_cast %211 : vector<16x32xf32> to vector<2x8x32xf32>
    %c0_77 = arith.constant 0 : index
    %c0_78 = arith.constant 0 : index
    %c0_79 = arith.constant 0 : index
    %213 = vector.load %arg14[%c0_77, %c0_78, %c0_79] : memref<2x8x32xf32, #tpu.memory_space<vmem>>, vector<2x8x32xf32>
    tpu.vector_store %arg14[%c0_77, %c0_78, %c0_79], %212 {strides = array<i32>} : memref<2x8x32xf32, #tpu.memory_space<vmem>>, vector<2x8x32xf32>,
    return
  }
  func.func @transform_0(%arg0: i32) -> (i32, i32) {
    %c0_i32 = arith.constant 0 : i32
    %c0_i32_0 = arith.constant 0 : i32
    %c0_i32_1 = arith.constant 0 : i32
    return %c0_i32, %c0_i32_0 : i32, i32
  }
  func.func @transform_1(%arg0: i32) -> (i32, i32, i32) {
    %c0_i32 = arith.constant 0 : i32
    %c0_i32_0 = arith.constant 0 : i32
    %c0_i32_1 = arith.constant 0 : i32
    return %arg0, %c0_i32, %c0_i32_0 : i32, i32, i32
  }
  func.func @transform_2(%arg0: i32) -> (i32, i32) {
    %c0_i32 = arith.constant 0 : i32
    %c0_i32_0 = arith.constant 0 : i32
    %c0_i32_1 = arith.constant 0 : i32
    return %c0_i32, %c0_i32_0 : i32, i32
  }
  func.func @transform_3(%arg0: i32) -> (i32, i32) {
    %c0_i32 = arith.constant 0 : i32
    %c0_i32_0 = arith.constant 0 : i32
    %c0_i32_1 = arith.constant 0 : i32
    return %c0_i32, %c0_i32_0 : i32, i32
  }
  func.func @transform_4(%arg0: i32) -> (i32, i32) {
    %c0_i32 = arith.constant 0 : i32
    %c0_i32_0 = arith.constant 0 : i32
    %c0_i32_1 = arith.constant 0 : i32
    return %c0_i32, %c0_i32_0 : i32, i32
  }
  func.func @transform_5(%arg0: i32) -> (i32, i32) {
    %c0_i32 = arith.constant 0 : i32
    %c0_i32_0 = arith.constant 0 : i32
    %c0_i32_1 = arith.constant 0 : i32
    return %c0_i32, %c0_i32_0 : i32, i32
  }
  func.func @transform_6(%arg0: i32) -> (i32, i32) {
    %c0_i32 = arith.constant 0 : i32
    %c0_i32_0 = arith.constant 0 : i32
    %c0_i32_1 = arith.constant 0 : i32
    return %c0_i32, %c0_i32_0 : i32, i32
  }
  func.func @transform_7(%arg0: i32) -> (i32, i32) {
    %c0_i32 = arith.constant 0 : i32
    %c0_i32_0 = arith.constant 0 : i32
    %c0_i32_1 = arith.constant 0 : i32
    return %c0_i32, %c0_i32_0 : i32, i32
  }
  func.func @transform_8(%arg0: i32) -> (i32, i32) {
    %c0_i32 = arith.constant 0 : i32
    %c0_i32_0 = arith.constant 0 : i32
    %c0_i32_1 = arith.constant 0 : i32
    return %c0_i32, %c0_i32_0 : i32, i32
  }
  func.func @transform_9(%arg0: i32) -> (i32, i32) {
    %c0_i32 = arith.constant 0 : i32
    %c0_i32_0 = arith.constant 0 : i32
    %c0_i32_1 = arith.constant 0 : i32
    return %c0_i32, %c0_i32_0 : i32, i32
  }
  func.func @transform_10(%arg0: i32) -> (i32, i32) {
    %c0_i32 = arith.constant 0 : i32
    %c0_i32_0 = arith.constant 0 : i32
    %c0_i32_1 = arith.constant 0 : i32
    return %c0_i32, %c0_i32_0 : i32, i32
  }
  func.func @transform_11(%arg0: i32) -> (i32, i32) {
    %c0_i32 = arith.constant 0 : i32
    %c0_i32_0 = arith.constant 0 : i32
    %c0_i32_1 = arith.constant 0 : i32
    return %c0_i32, %c0_i32_0 : i32, i32
  }
  func.func @transform_12(%arg0: i32) -> (i32, i32) {
    %c0_i32 = arith.constant 0 : i32
    %c0_i32_0 = arith.constant 0 : i32
    %c0_i32_1 = arith.constant 0 : i32
    return %c0_i32, %c0_i32_0 : i32, i32
  }
  func.func @transform_13(%arg0: i32) -> (i32, i32, i32) {
    %c0_i32 = arith.constant 0 : i32
    %c0_i32_0 = arith.constant 0 : i32
    %c0_i32_1 = arith.constant 0 : i32
    return %arg0, %c0_i32, %c0_i32_0 : i32, i32, i32
  }
}

</mosaic_0001>

<bundles_post_ra>
// kernel: tpu_custom_call.1
= control target key start
LH: loop header
LB: loop body
LE: loop exit
PB: predicated region body
PF: predicated region fallthrough
CT: control target
= control target key end

     0   :  { %vm51_vm0 = vcmask 261120   ;;  %s2157_s0 = inlined_call_operand.<no memory space> [shape: f32[1,1], index: 0, kind: input, shape index: {}]   ;;  %s2158_s1 = inlined_call_operand.vmem [shape: f32[2,8,32], index: 1, kind: input, shape index: {}]   ;;  %s2159_s2 = inlined_call_operand.vmem [shape: f32[1,32], index: 2, kind: input, shape index: {}]   ;;  %s2160_s3 = inlined_call_operand.vmem [shape: f32[1,32], index: 3, kind: input, shape index: {}]   ;;  %s2161_s4 = inlined_call_operand.vmem [shape: bf16[32,96], index: 4, kind: input, shape index: {}]   ;;  %s2162_s5 = inlined_call_operand.vmem [shape: bf16[32,32], index: 5, kind: input, shape index: {}]   ;;  %s2163_s6 = inlined_call_operand.vmem [shape: f32[1,32], index: 6, kind: input, shape index: {}]   ;;  %s2164_s7 = inlined_call_operand.vmem [shape: f32[1,32], index: 7, kind: input, shape index: {}]   ;;  %s2165_s8 = inlined_call_operand.vmem [shape: f32[1,32], index: 8, kind: input, shape index: {}]   ;;  %s2166_s9 = inlined_call_operand.vmem [shape: bf16[32,128], index: 9, kind: input, shape index: {}]   ;;  %s2167_s10 = inlined_call_operand.vmem [shape: f32[1,128], index: 10, kind: input, shape index: {}]   ;;  %s2168_s11 = inlined_call_operand.vmem [shape: bf16[128,32], index: 11, kind: input, shape index: {}]   ;;  %s2169_s12 = inlined_call_operand.vmem [shape: f32[1,32], index: 12, kind: input, shape index: {}]   ;;  %s2170_s13 = inlined_call_operand.hbm [shape: f32[2,8,32], index: 13, kind: output, shape index: {}]  }
   0x1   :  { %v1887_v0 = vld [vmem:[%s2158_s1] sm:$0xff]  ;;  %v1892_v1 = vld [vmem:[%s2158_s1 + $0x8] sm:$0xff] }
   0x2   :  { %v52_v2 = vsel %vm51_vm0, %v1887_v0, 0.0  ;;  %v55_v3 = vsel %vm51_vm0, %v1892_v1, 0.0 }
   0x3   :  { %53 = vadd.xlane.f32.xlu0 %v52_v2 }
   0x7   :  { %56 = vadd.xlane.f32.xlu0 %v55_v3 }
   0x8   :  { %19 = vsyncpa [#allocation5], 0  ;;  %v1711_v14 = vld [vmem:[%s2161_s4 + $0x8] sm:$0xff]   ;;  %v1795_v15 = vmov 0.0   ;;  %vm1796_vm1 = vmmov 0   ;;  %v1712_v16 = vld [vmem:[%s2161_s4] sm:$0xff]   ;;  %v157_v40 = vstv %s2157_s0 }
   0x9   :  { %1552 = vmatprep.subr.bf16.mxu0 %v1795_v15  ;;  %1556 = vmatprep.mubr.msk.bf16.mxu0 %vm1796_vm1, %v1795_v15  ;;  %v1454_v25 = vld [vmem:[%s2159_s2] ss:$0 sm:$0xff]  ;;  %s1797_s2 = smov 96   ;;  %vm173_vm2 = vcmask 64512   ;;  %s1798_s0 = smov 64   ;;  %vm298_vm3 = vcmask 1043456  }
   0xa   :  { %1553 = vmatpush3.bf16.msra.mxu0 %v1711_v14  ;;  %1572 = vmatprep.subr.bf16.mxu1 %v1795_v15  ;;  %v1455_v29 = vld [vmem:[%s2160_s3] ss:$0 sm:$0xff]  ;;  %s1799_s19 = smov 88   ;;  %s1800_s20 = smov 120   ;;  %vm620_vm4 = vcmask 130112   ;;  %vm851_vm5 = vcmask 195712  }
   0xb   :  { %1554 = vmatprep.subr.bf16.mxu0 %v1795_v15  ;;  %1574 = vmatprep.mubr.msk.bf16.mxu1 %vm1796_vm1, %v1795_v15  ;;  %s1801_s21 = smov 56   ;;  %s1802_s22 = smov 80   ;;  %vm1082_vm6 = vcmask 261312  }
   0xc   :  { %s1803_s23 = smov 112   ;;  %s1804_s24 = smov 48  }
   0xd   :  { %s1805_s25 = smov 72   ;;  %s1806_s26 = smov 104  }
   0xe   :  { %1555 = vmatpush3.bf16.msra.mxu0 %v1712_v16  ;;  %s1807_s27 = smov 40   ;;  %s1808_s28 = smov 8  }
   0xf   :  { %1560 = vmatprep.subr.bf16.mxu0 %v1795_v15  ;;  %s1809_s1 = smov 16   ;;  %s1810_s15 = smov 24  }
  0x8c   :  { %v54_v4 = vpop.xlane.xlu0 %53 }
  0x8d   :  { %v59_v5 = vmul.f32 0.03125, %v54_v4 }
  0x8f   :  { %v61_v6 = vsub.f32 %v1887_v0, %v59_v5 }
  0x90   :  { %v57_v7 = vpop.xlane.xlu0 %56 }
  0x91   :  { %v60_v8 = vmul.f32 0.03125, %v57_v7  ;;  %v63_v9 = vmul.f32 %v61_v6, %v61_v6 }
  0x93   :  { %v62_v10 = vsub.f32 %v1892_v1, %v60_v8  ;;  %v65_v11 = vsel %vm51_vm0, %v63_v9, 0.0 }
  0x94   :  { %66 = vadd.xlane.f32.xlu1 %v65_v11 }
  0x95   :  { %v64_v12 = vmul.f32 %v62_v10, %v62_v10 }
  0x97   :  { %v68_v13 = vsel %vm51_vm0, %v64_v12, 0.0 }
  0x98   :  { %69 = vadd.xlane.f32.xlu1 %v68_v13 }
 0x11d   :  { %v67_v17 = vpop.xlane.xlu1 %66 }
 0x11e   :  { %v71_v18 = vmul.f32 0.03125, %v67_v17 }
 0x120   :  { %v73_v19 = vadd.f32 1e-05, %v71_v18 }
 0x121   :  { %v70_v20 = vpop.xlane.xlu1 %69 }
 0x122   :  { %1725 = vrsqrt.f32 %v73_v19  ;;  %v72_v21 = vmul.f32 0.03125, %v70_v20 }
 0x124   :  { %v74_v22 = vadd.f32 1e-05, %v72_v21 }
 0x126   :  { %1727 = vrsqrt.f32 %v74_v22 }
 0x12f   :  { %v1726_v23 = vpop.eup %1725 }
 0x130   :  { %v77_v24 = vmul.f32 %v1726_v23, %v61_v6 }
 0x132   :  { %v85_v28 = vmul.f32 %v1454_v25, %v77_v24 }
 0x133   :  { %v1728_v26 = vpop.eup %1727 }
 0x134   :  { %v78_v27 = vmul.f32 %v1728_v26, %v62_v10  ;;  %v93_v31 = vadd.f32 %v1455_v29, %v85_v28 }
 0x136   :  { %v86_v30 = vmul.f32 %v1454_v25, %v78_v27 }
 0x138   :  { %v94_v32 = vadd.f32 %v1455_v29, %v86_v30 }
 0x13a   :  { %v95_v33 = vpack.c.bf16 %v94_v32, %v93_v31 }
 0x13c   :  { %1557 = vmatmul.mubr.msk.bf16.vlgmr.msra.gmra.mxu0 %vm51_vm0, %v95_v33 }
 0x13d   :  { %1562 = vmatprep.mubr.msk.bf16.mxu0 %vm1796_vm1, %v1795_v15 }
 0x1fc   :  { %v149_v34 = vpop.f32.mrf.mxu0 }
 0x1fd   :  { %v1925_v35 = vpack.c.bf16 %v149_v34, %v149_v34  ;;  %v158_v43 = vmul.f32 %v157_v40, %v149_v34 }
 0x1fe   :  { %v1558_v36 = vpop.f32.mrf.mxu0 }
 0x1ff   :  { %171 = vrot.lane.b32.xlu0 %v1925_v35, %s1797_s2  ;;  %v1936_v45 = vpack.c.bf16 %v158_v43, %v158_v43 }
 0x200   :  { %v152_v37 = vpop.f32.mrf.mxu0 }
 0x201   :  { %v1928_v38 = vpack.c.bf16 %v152_v37, %v152_v37  ;;  %v159_v47 = vmul.f32 %v157_v40, %v152_v37 }
 0x202   :  { %v1559_v39 = vpop.f32.mrf.mxu0 }
 0x203   :  { %221 = vrot.lane.b32.xlu1 %v1928_v38, %s1797_s2  ;;  %v1944_v48 = vpack.c.bf16 %v159_v47, %v159_v47 }
 0x271   :  { %v172_v41 = vpop.permute.xlu0 %171 }
 0x272   :  { %v178_v42 = vsel %vm173_vm2, %v172_v41, 0 }
 0x273   :  { %1561 = vmatpush3.bf16.xpose.msra.mxu0 %v178_v42 }
 0x274   :  { %1566 = vmatprep.subr.bf16.mxu0 %v1795_v15 }
 0x275   :  { %v222_v44 = vpop.permute.xlu1 %221 }
 0x276   :  { %v227_v46 = vsel %vm173_vm2, %v222_v44, 0 }
 0x27a   :  { %1563 = vmatmul.mubr.msk.bf16.vlgmr.msra.gmra.mxu0 %vm173_vm2, %v1936_v45 }
 0x27b   :  { %1567 = vmatpush3.bf16.xpose.msra.mxu0 %v227_v46  ;;  %1568 = vmatprep.mubr.msk.bf16.mxu0 %vm1796_vm1, %v1795_v15 }
 0x27c   :  { %1578 = vmatprep.subr.bf16.mxu0 %v1795_v15 }
 0x282   :  { %1569 = vmatmul.mubr.msk.bf16.vlgmr.msra.gmra.mxu0 %vm173_vm2, %v1944_v48 }
 0x283   :  { %1580 = vmatprep.mubr.msk.bf16.mxu0 %vm1796_vm1, %v1795_v15 }
 0x33a   :  { %v214_v49 = vpop.f32.mrf.mxu0 }
 0x33b   :  { %v269_v50 = vsel %vm173_vm2, %v214_v49, -inf }
 0x33c   :  { %270 = vmax.xlane.f32.xlu1 %v269_v50  ;;  %v1564_v51 = vpop.f32.mrf.mxu0 }
 0x33e   :  { %v217_v52 = vpop.f32.mrf.mxu0 }
 0x340   :  { %v1565_v53 = vpop.f32.mrf.mxu0 }
 0x342   :  { %v263_v54 = vpop.f32.mrf.mxu0 }
 0x343   :  { %v272_v55 = vsel %vm173_vm2, %v263_v54, -inf }
 0x344   :  { %273 = vmax.xlane.f32.xlu0 %v272_v55  ;;  %v1570_v56 = vpop.f32.mrf.mxu0 }
 0x346   :  { %v266_v57 = vpop.f32.mrf.mxu0 }
 0x348   :  { %v1571_v58 = vpop.f32.mrf.mxu0 }
 0x34d   :  { %342 = vrot.lane.b32.xlu1 %v1928_v38, %s1798_s0 }
 0x351   :  { %394 = vrot.lane.b32.xlu1 %v1925_v35, %s1799_s19 }
 0x3c5   :  { %v271_v59 = vpop.xlane.xlu1 %270 }
 0x3c6   :  { %v275_v60 = vsub.f32 %v214_v49, %v271_v59 }
 0x3c8   :  { %v277_v61 = vmul.f32 1.442695, %v275_v60 }
 0x3c9   :  { %v343_v62 = vpop.permute.xlu1 %342 }
 0x3ca   :  { %1729 = vpow2.f32 %v277_v61  ;;  %v348_v63 = vsel %vm298_vm3, %v343_v62, 0 }
 0x3cb   :  { %1579 = vmatpush3.bf16.msra.mxu0 %v348_v63 }
 0x3cc   :  { %1590 = vmatprep.subr.bf16.mxu0 %v1795_v15 }
 0x3cd   :  { %v274_v2 = vpop.xlane.xlu0 %273  ;;  %v395_v10 = vpop.permute.xlu1 %394 }
 0x3ce   :  { %v276_v3 = vsub.f32 %v263_v54, %v274_v2  ;;  %v400_v18 = vsel %vm173_vm2, %v395_v10, 0 }
 0x3d0   :  { %v279_v4 = vmul.f32 1.442695, %v276_v3 }
 0x3d2   :  { %1731 = vpow2.f32 %v279_v4 }
 0x3d7   :  { %v1730_v5 = vpop.eup %1729 }
 0x3d8   :  { %v281_v6 = vsel %vm173_vm2, %v1730_v5, 0.0 }
 0x3d9   :  { %282 = vadd.xlane.f32.xlu0 %v281_v6 }
 0x3df   :  { %v1732_v7 = vpop.eup %1731 }
 0x3e0   :  { %v284_v8 = vsel %vm173_vm2, %v1732_v7, 0.0 }
 0x3e1   :  { %285 = vadd.xlane.f32.xlu1 %v284_v8 }
 0x3ef   :  { %293 = vrot.lane.b32.xlu0 %v1925_v35, %s1798_s0 }
 0x3f2   :  { %444 = vrot.lane.b32.xlu1 %v1928_v38, %s1799_s19 }
 0x3f3   :  { %392 = vrot.lane.b32.xlu0 %v1936_v45, %s1800_s20 }
 0x3f6   :  { %442 = vrot.lane.b32.xlu1 %v1944_v48, %s1800_s20 }
 0x462   :  { %v283_v9 = vpop.xlane.xlu0 %282 }
 0x463   :  { %1733 = vrcp.f32 %v283_v9 }
 0x466   :  { %v294_v11 = vpop.permute.xlu0 %293 }
 0x467   :  { %v300_v12 = vsel %vm298_vm3, %v294_v11, 0 }
 0x468   :  { %1573 = vmatpush3.bf16.msra.mxu1 %v300_v12 }
 0x469   :  { %1584 = vmatprep.subr.bf16.mxu1 %v1795_v15 }
 0x46a   :  { %v286_v13 = vpop.xlane.xlu1 %285  ;;  %v393_v23 = vpop.permute.xlu0 %392 }
 0x46b   :  { %1735 = vrcp.f32 %v286_v13 }
 0x46e   :  { %v445_v21 = vpop.permute.xlu1 %444 }
 0x46f   :  { %v450_v24 = vsel %vm173_vm2, %v445_v21, 0 }
 0x470   :  { %v1734_v14 = vpop.eup %1733 }
 0x471   :  { %v289_v16 = vmul.f32 %v1734_v14, %v1730_v5 }
 0x472   :  { %v443_v25 = vpop.permute.xlu1 %442 }
 0x473   :  { %v291_v17 = vpack.c.bf16 %v289_v16, %v289_v16 }
 0x475   :  { %1575 = vmatmul.mubr.msk.bf16.vlgmr.msra.gmra.mxu1 %vm173_vm2, %v291_v17 }
 0x476   :  { %1585 = vmatpush3.bf16.xpose.msra.mxu1 %v400_v18  ;;  %1586 = vmatprep.mubr.msk.bf16.mxu1 %vm1796_vm1, %v1795_v15 }
 0x477   :  { %1596 = vmatprep.subr.bf16.mxu1 %v1795_v15 }
 0x478   :  { %v1736_v19 = vpop.eup %1735 }
 0x479   :  { %v290_v20 = vmul.f32 %v1736_v19, %v1732_v7 }
 0x47b   :  { %v292_v22 = vpack.c.bf16 %v290_v20, %v290_v20 }
 0x47d   :  { %1581 = vmatmul.mubr.msk.bf16.vlgmr.msra.gmra.mxu0 %vm173_vm2, %v292_v22  ;;  %1587 = vmatmul.mubr.msk.bf16.vlgmr.msra.gmra.mxu1 %vm173_vm2, %v393_v23 }
 0x47e   :  { %1591 = vmatpush3.bf16.xpose.msra.mxu0 %v450_v24  ;;  %1592 = vmatprep.mubr.msk.bf16.mxu0 %vm1796_vm1, %v1795_v15 }
 0x47f   :  { %1602 = vmatprep.subr.bf16.mxu0 %v1795_v15  ;;  %1598 = vmatprep.mubr.msk.bf16.mxu1 %vm1796_vm1, %v1795_v15 }
 0x485   :  { %1593 = vmatmul.mubr.msk.bf16.vlgmr.msra.gmra.mxu0 %vm173_vm2, %v443_v25 }
 0x486   :  { %1604 = vmatprep.mubr.msk.bf16.mxu0 %vm1796_vm1, %v1795_v15 }
 0x535   :  { %v336_v26 = vpop.f32.mrf.mxu1 }
 0x536   :  { %390 = vst.msk [vmem:[#allocation2] sm:$0xff] %vm173_vm2, %v336_v26 }
 0x537   :  { %v1576_v27 = vpop.f32.mrf.mxu1 }
 0x539   :  { %v339_v28 = vpop.f32.mrf.mxu1 }
 0x53b   :  { %v1577_v29 = vpop.f32.mrf.mxu1 }
 0x53d   :  { %v384_v30 = vpop.f32.mrf.mxu0  ;;  %v436_v31 = vpop.f32.mrf.mxu1 }
 0x53e   :  { %391 = vst.msk [vmem:[#allocation2 + $0x8] sm:$0xff] %vm173_vm2, %v384_v30  ;;  %v492_v32 = vsel %vm173_vm2, %v436_v31, -inf }
 0x53f   :  { %493 = vmax.xlane.f32.xlu0 %v492_v32  ;;  %v1582_v33 = vpop.f32.mrf.mxu0  ;;  %v1588_v34 = vpop.f32.mrf.mxu1 }
 0x541   :  { %v387_v36 = vpop.f32.mrf.mxu0  ;;  %v439_v37 = vpop.f32.mrf.mxu1 }
 0x543   :  { %v1583_v39 = vpop.f32.mrf.mxu0  ;;  %v1589_v40 = vpop.f32.mrf.mxu1 }
 0x545   :  { %v486_v41 = vpop.f32.mrf.mxu0 }
 0x546   :  { %v495_v42 = vsel %vm173_vm2, %v486_v41, -inf }
 0x547   :  { %496 = vmax.xlane.f32.xlu1 %v495_v42  ;;  %v1594_v43 = vpop.f32.mrf.mxu0 }
 0x549   :  { %v489_v44 = vpop.f32.mrf.mxu0 }
 0x54b   :  { %v1595_v46 = vpop.f32.mrf.mxu0 }
 0x558   :  { %564 = vrot.lane.b32.xlu1 %v1928_v38, %s1801_s21 }
 0x55c   :  { %625 = vrot.lane.b32.xlu1 %v1925_v35, %s1802_s22 }
 0x560   :  { %675 = vrot.lane.b32.xlu1 %v1928_v38, %s1802_s22 }
 0x564   :  { %673 = vrot.lane.b32.xlu1 %v1944_v48, %s1803_s23 }
 0x5c8   :  { %v494_v47 = vpop.xlane.xlu0 %493 }
 0x5c9   :  { %v498_v49 = vsub.f32 %v436_v31, %v494_v47 }
 0x5cb   :  { %v500_v50 = vmul.f32 1.442695, %v498_v49 }
 0x5cd   :  { %1737 = vpow2.f32 %v500_v50 }
 0x5d0   :  { %v497_v51 = vpop.xlane.xlu1 %496 }
 0x5d1   :  { %v499_v52 = vsub.f32 %v486_v41, %v497_v51 }
 0x5d3   :  { %v502_v53 = vmul.f32 1.442695, %v499_v52 }
 0x5d4   :  { %v565_v54 = vpop.permute.xlu1 %564 }
 0x5d5   :  { %1739 = vpow2.f32 %v502_v53  ;;  %v570_v55 = vsel %vm298_vm3, %v565_v54, 0 }
 0x5d6   :  { %1603 = vmatpush3.bf16.msra.mxu0 %v570_v55 }
 0x5d7   :  { %1614 = vmatprep.subr.bf16.mxu0 %v1795_v15 }
 0x5d8   :  { %v626_v4 = vpop.permute.xlu1 %625 }
 0x5d9   :  { %v631_v6 = vsel %vm173_vm2, %v626_v4, 0 }
 0x5da   :  { %v1738_v56 = vpop.eup %1737 }
 0x5db   :  { %v504_v57 = vsel %vm173_vm2, %v1738_v56, 0.0 }
 0x5dc   :  { %505 = vadd.xlane.f32.xlu0 %v504_v57  ;;  %v676_v9 = vpop.permute.xlu1 %675 }
 0x5dd   :  { %v681_v12 = vsel %vm173_vm2, %v676_v9, 0 }
 0x5e0   :  { %v674_v13 = vpop.permute.xlu1 %673 }
 0x5e2   :  { %v1740_v58 = vpop.eup %1739 }
 0x5e3   :  { %v507_v59 = vsel %vm173_vm2, %v1740_v58, 0.0 }
 0x5e4   :  { %508 = vadd.xlane.f32.xlu0 %v507_v59 }
 0x5fa   :  { %516 = vrot.lane.b32.xlu0 %v1925_v35, %s1801_s21 }
 0x5fe   :  { %623 = vrot.lane.b32.xlu0 %v1936_v45, %s1803_s23 }
 0x665   :  { %v506_v60 = vpop.xlane.xlu0 %505 }
 0x666   :  { %1741 = vrcp.f32 %v506_v60 }
 0x66d   :  { %v509_v61 = vpop.xlane.xlu0 %508 }
 0x66e   :  { %1743 = vrcp.f32 %v509_v61 }
 0x671   :  { %v517_v62 = vpop.permute.xlu0 %516 }
 0x672   :  { %v522_v63 = vsel %vm298_vm3, %v517_v62, 0 }
 0x673   :  { %v1742_v2 = vpop.eup %1741  ;;  %1597 = vmatpush3.bf16.msra.mxu1 %v522_v63 }
 0x674   :  { %1608 = vmatprep.subr.bf16.mxu1 %v1795_v15  ;;  %v512_v3 = vmul.f32 %v1742_v2, %v1738_v56 }
 0x675   :  { %v624_v11 = vpop.permute.xlu0 %623 }
 0x676   :  { %v514_v5 = vpack.c.bf16 %v512_v3, %v512_v3 }
 0x678   :  { %1599 = vmatmul.mubr.msk.bf16.vlgmr.msra.gmra.mxu1 %vm173_vm2, %v514_v5 }
 0x679   :  { %1609 = vmatpush3.bf16.xpose.msra.mxu1 %v631_v6  ;;  %1610 = vmatprep.mubr.msk.bf16.mxu1 %vm1796_vm1, %v1795_v15 }
 0x67a   :  { %1620 = vmatprep.subr.bf16.mxu1 %v1795_v15 }
 0x67b   :  { %v1744_v7 = vpop.eup %1743 }
 0x67c   :  { %v513_v8 = vmul.f32 %v1744_v7, %v1740_v58 }
 0x67e   :  { %v515_v10 = vpack.c.bf16 %v513_v8, %v513_v8 }
 0x680   :  { %1605 = vmatmul.mubr.msk.bf16.vlgmr.msra.gmra.mxu0 %vm173_vm2, %v515_v10  ;;  %1611 = vmatmul.mubr.msk.bf16.vlgmr.msra.gmra.mxu1 %vm173_vm2, %v624_v11 }
 0x681   :  { %1615 = vmatpush3.bf16.xpose.msra.mxu0 %v681_v12  ;;  %1616 = vmatprep.mubr.msk.bf16.mxu0 %vm1796_vm1, %v1795_v15 }
 0x682   :  { %1626 = vmatprep.subr.bf16.mxu0 %v1795_v15  ;;  %1622 = vmatprep.mubr.msk.bf16.mxu1 %vm1796_vm1, %v1795_v15 }
 0x688   :  { %1617 = vmatmul.mubr.msk.bf16.vlgmr.msra.gmra.mxu0 %vm173_vm2, %v674_v13 }
 0x689   :  { %1628 = vmatprep.mubr.msk.bf16.mxu0 %vm1796_vm1, %v1795_v15 }
 0x738   :  { %v2012_v14 = vpop.f32.mrf.mxu1 }
 0x73a   :  { %v1600_v16 = vpop.f32.mrf.mxu1 }
 0x73c   :  { %v561_v17 = vpop.f32.mrf.mxu1 }
 0x73e   :  { %v1601_v18 = vpop.f32.mrf.mxu1 }
 0x740   :  { %v2014_v19 = vpop.f32.mrf.mxu0  ;;  %v667_v20 = vpop.f32.mrf.mxu1 }
 0x741   :  { %v723_v21 = vsel %vm173_vm2, %v667_v20, -inf }
 0x742   :  { %724 = vmax.xlane.f32.xlu0 %v723_v21  ;;  %v1606_v22 = vpop.f32.mrf.mxu0  ;;  %v1612_v23 = vpop.f32.mrf.mxu1 }
 0x744   :  { %v609_v24 = vpop.f32.mrf.mxu0  ;;  %v670_v25 = vpop.f32.mrf.mxu1 }
 0x746   :  { %v1607_v26 = vpop.f32.mrf.mxu0  ;;  %v1613_v27 = vpop.f32.mrf.mxu1 }
 0x748   :  { %v717_v28 = vpop.f32.mrf.mxu0 }
 0x749   :  { %v726_v29 = vsel %vm173_vm2, %v717_v28, -inf }
 0x74a   :  { %727 = vmax.xlane.f32.xlu1 %v726_v29  ;;  %v1618_v30 = vpop.f32.mrf.mxu0 }
 0x74c   :  { %v720_v31 = vpop.f32.mrf.mxu0 }
 0x74e   :  { %v1619_v32 = vpop.f32.mrf.mxu0 }
 0x75b   :  { %795 = vrot.lane.b32.xlu1 %v1928_v38, %s1804_s24 }
 0x75f   :  { %856 = vrot.lane.b32.xlu1 %v1925_v35, %s1805_s25 }
 0x763   :  { %906 = vrot.lane.b32.xlu1 %v1928_v38, %s1805_s25 }
 0x767   :  { %904 = vrot.lane.b32.xlu1 %v1944_v48, %s1806_s26 }
 0x7cb   :  { %v725_v33 = vpop.xlane.xlu0 %724 }
 0x7cc   :  { %v729_v34 = vsub.f32 %v667_v20, %v725_v33 }
 0x7ce   :  { %v731_v36 = vmul.f32 1.442695, %v729_v34 }
 0x7d0   :  { %1745 = vpow2.f32 %v731_v36 }
 0x7d3   :  { %v728_v37 = vpop.xlane.xlu1 %727 }
 0x7d4   :  { %v730_v39 = vsub.f32 %v717_v28, %v728_v37 }
 0x7d6   :  { %v733_v40 = vmul.f32 1.442695, %v730_v39 }
 0x7d7   :  { %v796_v41 = vpop.permute.xlu1 %795 }
 0x7d8   :  { %1747 = vpow2.f32 %v733_v40  ;;  %v801_v42 = vsel %vm298_vm3, %v796_v41, 0 }
 0x7d9   :  { %1627 = vmatpush3.bf16.msra.mxu0 %v801_v42 }
 0x7da   :  { %1638 = vmatprep.subr.bf16.mxu0 %v1795_v15 }
 0x7db   :  { %v857_v54 = vpop.permute.xlu1 %856 }
 0x7dc   :  { %v862_v56 = vsel %vm173_vm2, %v857_v54, 0 }
 0x7dd   :  { %v1746_v43 = vpop.eup %1745 }
 0x7de   :  { %v735_v44 = vsel %vm173_vm2, %v1746_v43, 0.0 }
 0x7df   :  { %736 = vadd.xlane.f32.xlu0 %v735_v44  ;;  %v907_v58 = vpop.permute.xlu1 %906 }
 0x7e0   :  { %v912_v61 = vsel %vm173_vm2, %v907_v58, 0 }
 0x7e3   :  { %v905_v62 = vpop.permute.xlu1 %904 }
 0x7e5   :  { %v1748_v46 = vpop.eup %1747 }
 0x7e6   :  { %v738_v48 = vsel %vm173_vm2, %v1748_v46, 0.0 }
 0x7e7   :  { %739 = vadd.xlane.f32.xlu0 %v738_v48  ;;  %v1713_v48 = vld [vmem:[%s2162_s5 + $0x8] sm:$0xff]  }
 0x7fd   :  { %747 = vrot.lane.b32.xlu0 %v1925_v35, %s1804_s24 }
 0x801   :  { %854 = vrot.lane.b32.xlu0 %v1936_v45, %s1806_s26 }
 0x868   :  { %v737_v47 = vpop.xlane.xlu0 %736 }
 0x869   :  { %1749 = vrcp.f32 %v737_v47  ;;  %v1714_v47 = vld [vmem:[%s2162_s5] sm:$0xff]  }
 0x870   :  { %v740_v49 = vpop.xlane.xlu0 %739 }
 0x871   :  { %1751 = vrcp.f32 %v740_v49 }
 0x874   :  { %v748_v50 = vpop.permute.xlu0 %747 }
 0x875   :  { %v753_v51 = vsel %vm298_vm3, %v748_v50, 0 }
 0x876   :  { %v1750_v52 = vpop.eup %1749  ;;  %1621 = vmatpush3.bf16.msra.mxu1 %v753_v51 }
 0x877   :  { %1632 = vmatprep.subr.bf16.mxu1 %v1795_v15  ;;  %v743_v53 = vmul.f32 %v1750_v52, %v1746_v43 }
 0x878   :  { %v855_v60 = vpop.permute.xlu0 %854 }
 0x879   :  { %v745_v55 = vpack.c.bf16 %v743_v53, %v743_v53 }
 0x87b   :  { %1623 = vmatmul.mubr.msk.bf16.vlgmr.msra.gmra.mxu1 %vm173_vm2, %v745_v55 }
 0x87c   :  { %1633 = vmatpush3.bf16.xpose.msra.mxu1 %v862_v56  ;;  %1634 = vmatprep.mubr.msk.bf16.mxu1 %vm1796_vm1, %v1795_v15 }
 0x87d   :  { %1644 = vmatprep.subr.bf16.mxu1 %v1795_v15 }
 0x87e   :  { %v1752_v45 = vpop.eup %1751 }
 0x87f   :  { %v744_v57 = vmul.f32 %v1752_v45, %v1748_v46 }
 0x881   :  { %v746_v59 = vpack.c.bf16 %v744_v57, %v744_v57 }
 0x883   :  { %1629 = vmatmul.mubr.msk.bf16.vlgmr.msra.gmra.mxu0 %vm173_vm2, %v746_v59  ;;  %1635 = vmatmul.mubr.msk.bf16.vlgmr.msra.gmra.mxu1 %vm173_vm2, %v855_v60 }
 0x884   :  { %1639 = vmatpush3.bf16.xpose.msra.mxu0 %v912_v61  ;;  %1640 = vmatprep.mubr.msk.bf16.mxu0 %vm1796_vm1, %v1795_v15  ;;  %v1479_v61 = vld [vmem:[%s2163_s6] ss:$0 sm:$0xff]  ;;  %s1812_s6 = smov [#allocation4]  }
 0x885   :  { %1650 = vmatprep.subr.bf16.mxu0 %v1795_v15  ;;  %1646 = vmatprep.mubr.msk.bf16.mxu1 %vm1796_vm1, %v1795_v15  ;;  %s1443_s17 = sshll.u32 %s1812_s6, 4  ;;  %s1444_s17 = int_to_ptr.vmem [resolvable:$true] %s1443_s17 }
 0x886   :  { %s1773_s2 = scalar_lea.vmem %s1444_s17, 256  ;;  %p1778_p1 = scmp.lt.s32.totalorder %s1444_s17, %s1444_s17 }
 0x887   :  { %p1774_p0 = scmp.ne.s32.totalorder %s1444_s17, %s1773_s2  ;;  %p1779_p2 = scmp.lt.s32.totalorder %s1773_s2, %s1773_s2 }
 0x889   :  { %p1780_p3 = por %p1779_p2, %p1778_p1 }
 0x88b   :  { %1641 = vmatmul.mubr.msk.bf16.vlgmr.msra.gmra.mxu0 %vm173_vm2, %v905_v62  ;;  %p1781_p4 = pnand %p1780_p3, %p1774_p0 }
 0x88c   :  { %1652 = vmatprep.mubr.msk.bf16.mxu0 %vm1796_vm1, %v1795_v15 }
 0x93b   :  { %v789_v63 = vpop.f32.mrf.mxu1 }
 0x93d   :  { %v1624_v2 = vpop.f32.mrf.mxu1 }
 0x93f   :  { %v792_v3 = vpop.f32.mrf.mxu1 }
 0x941   :  { %v1625_v4 = vpop.f32.mrf.mxu1 }
 0x943   :  { %v837_v5 = vpop.f32.mrf.mxu0  ;;  %v898_v6 = vpop.f32.mrf.mxu1 }
 0x944   :  { %v954_v7 = vsel %vm173_vm2, %v898_v6, -inf }
 0x945   :  { %955 = vmax.xlane.f32.xlu0 %v954_v7  ;;  %v1630_v8 = vpop.f32.mrf.mxu0  ;;  %v1636_v9 = vpop.f32.mrf.mxu1 }
 0x947   :  { %v840_v10 = vpop.f32.mrf.mxu0  ;;  %v901_v11 = vpop.f32.mrf.mxu1 }
 0x949   :  { %v1631_v12 = vpop.f32.mrf.mxu0  ;;  %v1637_v13 = vpop.f32.mrf.mxu1 }
 0x94b   :  { %v948_v16 = vpop.f32.mrf.mxu0 }
 0x94c   :  { %v957_v17 = vsel %vm173_vm2, %v948_v16, -inf }
 0x94d   :  { %958 = vmax.xlane.f32.xlu1 %v957_v17  ;;  %v1642_v18 = vpop.f32.mrf.mxu0 }
 0x94f   :  { %v951_v20 = vpop.f32.mrf.mxu0 }
 0x951   :  { %v1643_v21 = vpop.f32.mrf.mxu0 }
 0x952   :  { %v1715_v21 = vld [vmem:[%s2166_s9 + $0x8] sm:$0xff]  }
 0x95e   :  { %1026 = vrot.lane.b32.xlu1 %v1928_v38, %s1807_s27 }
 0x962   :  { %614 = vrot.lane.b32.xlu1 %v2012_v14, %s1808_s28 }
 0x966   :  { %616 = vrot.lane.b32.xlu1 %v2014_v19, %s1808_s28 }
 0x96a   :  { %847 = vrot.lane.b32.xlu1 %v837_v5, %s1809_s1 }
 0x9ce   :  { %v956_v22 = vpop.xlane.xlu0 %955 }
 0x9cf   :  { %v960_v23 = vsub.f32 %v898_v6, %v956_v22  ;;  %v1716_v22 = vld [vmem:[%s2166_s9] sm:$0xff]  }
 0x9d1   :  { %v962_v24 = vmul.f32 1.442695, %v960_v23 }
 0x9d3   :  { %1753 = vpow2.f32 %v962_v24 }
 0x9d6   :  { %v959_v25 = vpop.xlane.xlu1 %958 }
 0x9d7   :  { %v961_v26 = vsub.f32 %v948_v16, %v959_v25 }
 0x9d9   :  { %v964_v27 = vmul.f32 1.442695, %v961_v26 }
 0x9da   :  { %v1027_v28 = vpop.permute.xlu1 %1026 }
 0x9db   :  { %1755 = vpow2.f32 %v964_v27  ;;  %v1032_v38 = vsel %vm298_vm3, %v1027_v28, 0 }
 0x9dc   :  { %1651 = vmatpush3.bf16.msra.mxu0 %v1032_v38 }
 0x9dd   :  { %1664 = vmatprep.subr.bf16.mxu0 %v1795_v15 }
 0x9de   :  { %v615_v14 = vpop.permute.xlu1 %614 }
 0x9df   :  { %621 = vst.msk [vmem:[#allocation2] sm:$0xff] %vm620_vm4, %v615_v14 }
 0x9e0   :  { %v1754_v19 = vpop.eup %1753 }
 0x9e1   :  { %v966_v29 = vsel %vm173_vm2, %v1754_v19, 0.0 }
 0x9e2   :  { %967 = vadd.xlane.f32.xlu0 %v966_v29  ;;  %v617_v30 = vpop.permute.xlu1 %616 }
 0x9e3   :  { %622 = vst.msk [vmem:[#allocation2 + $0x8] sm:$0xff] %vm620_vm4, %v617_v30 }
 0x9e6   :  { %v848_v31 = vpop.permute.xlu1 %847 }
 0x9e7   :  { %853 = vst.msk [vmem:[#allocation2 + $0x8] sm:$0xff] %vm851_vm5, %v848_v31 }
 0x9e8   :  { %v1756_v32 = vpop.eup %1755 }
 0x9e9   :  { %v969_v33 = vsel %vm173_vm2, %v1756_v32, 0.0 }
 0x9ea   :  { %970 = vadd.xlane.f32.xlu0 %v969_v33 }
 0xa00   :  { %978 = vrot.lane.b32.xlu0 %v1925_v35, %s1807_s27 }
 0xa04   :  { %845 = vrot.lane.b32.xlu0 %v789_v63, %s1809_s1 }
 0xa6b   :  { %v968_v34 = vpop.xlane.xlu0 %967 }
 0xa6c   :  { %1757 = vrcp.f32 %v968_v34 }
 0xa73   :  { %v971_v36 = vpop.xlane.xlu0 %970 }
 0xa74   :  { %1759 = vrcp.f32 %v971_v36 }
 0xa77   :  { %v979_v37 = vpop.permute.xlu0 %978 }
 0xa78   :  { %v984_v39 = vsel %vm298_vm3, %v979_v37, 0 }
 0xa79   :  { %v1758_v40 = vpop.eup %1757  ;;  %1645 = vmatpush3.bf16.msra.mxu1 %v984_v39  ;;  %v1717_v39 = vld [vmem:[%s2168_s11 + $0x38] sm:$0xff]  }
 0xa7a   :  { %v974_v41 = vmul.f32 %v1758_v40, %v1754_v19  ;;  %1656 = vmatprep.subr.bf16.mxu1 %v1795_v15  ;;  %v1483_v19 = vld [vmem:[%s2164_s7] ss:$0 sm:$0xff]  ;;  %v1718_v40 = vld [vmem:[%s2168_s11 + $0x30] sm:$0xff]  }
 0xa7b   :  { %v846_v42 = vpop.permute.xlu0 %845 }
 0xa7c   :  { %852 = vst.msk [vmem:[#allocation2] sm:$0xff] %vm851_vm5, %v846_v42  ;;  %v976_v43 = vpack.c.bf16 %v974_v41, %v974_v41  ;;  %v1719_v41 = vld [vmem:[%s2168_s11 + $0x28] sm:$0xff]   ;;  %v1720_v42 = vld [vmem:[%s2168_s11 + $0x20] sm:$0xff]  }
 0xa7e   :  { %1647 = vmatmul.mubr.msk.bf16.vlgmr.msra.gmra.mxu1 %vm173_vm2, %v976_v43  ;;  %v1721_v43 = vld [vmem:[%s2168_s11 + $0x18] sm:$0xff]  }
 0xa7f   :  { %1660 = vmatprep.mubr.msk.bf16.mxu1 %vm1796_vm1, %v1795_v15  ;;  %1657 = vmatpush3.bf16.msra.mxu1 %v1713_v48  ;;  %v1485_v48 = vld [vmem:[%s2167_s10] ss:$0 sm:$0xff] }
 0xa80   :  { %1658 = vmatprep.subr.bf16.mxu1 %v1795_v15 }
 0xa81   :  { %v1760_v35 = vpop.eup %1759 }
 0xa82   :  { %v975_v44 = vmul.f32 %v1760_v35, %v1756_v32  ;;  %v1484_v32 = vld [vmem:[%s2165_s8] ss:$0 sm:$0xff]  ;;  %v1722_v35 = vld [vmem:[%s2168_s11 + $0x10] sm:$0xff]  }
 0xa83   :  { %1659 = vmatpush3.bf16.msra.mxu1 %v1714_v47 }
 0xa84   :  { %v977_v46 = vpack.c.bf16 %v975_v44, %v975_v44  ;;  %1672 = vmatprep.subr.bf16.mxu1 %v1795_v15  ;;  %v1723_v44 = vld [vmem:[%s2168_s11 + $0x8] sm:$0xff]  }
 0xa86   :  { %1653 = vmatmul.mubr.msk.bf16.vlgmr.msra.gmra.mxu0 %vm173_vm2, %v977_v46  ;;  %v1724_v46 = vld [vmem:[%s2168_s11] sm:$0xff]  }
 0xa87   :  { %1668 = vmatprep.mubr.msk.bf16.mxu0 %vm1796_vm1, %v1795_v15  ;;  %1665 = vmatpush3.bf16.msra.mxu0 %v1715_v21 }
 0xa88   :  { %1666 = vmatprep.subr.bf16.mxu0 %v1795_v15 }
 0xa8b   :  { %1667 = vmatpush3.bf16.msra.mxu0 %v1716_v22 }
 0xb3e   :  { %v1020_v49 = vpop.f32.mrf.mxu1 }
 0xb3f   :  { %1076 = vrot.lane.b32.xlu0 %v1020_v49, %s1810_s15 }
 0xb40   :  { %v1648_v50 = vpop.f32.mrf.mxu1 }
 0xb42   :  { %v1023_v51 = vpop.f32.mrf.mxu1 }
 0xb44   :  { %v1649_v52 = vpop.f32.mrf.mxu1 }
 0xb46   :  { %v1068_v53 = vpop.f32.mrf.mxu0 }
 0xb47   :  { %1078 = vrot.lane.b32.xlu1 %v1068_v53, %s1810_s15 }
 0xb48   :  { %v1654_v54 = vpop.f32.mrf.mxu0 }
 0xb49   :  { %v1811_v54 = vmov -1.0  }
 0xb4a   :  { %v1071_v55 = vpop.f32.mrf.mxu0 }
 0xb4c   :  { %v1655_v56 = vpop.f32.mrf.mxu0 }
 0xbb1   :  { %v1077_v45 = vpop.permute.xlu0 %1076 }
 0xbb2   :  { %1083 = vst.msk [vmem:[#allocation2] sm:$0xff] %vm1082_vm6, %v1077_v45 }
 0xbb9   :  { %v1079_v57 = vpop.permute.xlu1 %1078  ;;  %v1085_v58 = vld [vmem:[#allocation2] sm:$0xff] }
 0xbba   :  { %1084 = vst.msk [vmem:[#allocation2 + $0x8] sm:$0xff] %vm1082_vm6, %v1079_v57 }
 0xbc1   :  { %v1086_v59 = vld [vmem:[#allocation2 + $0x8] sm:$0xff] }
 0xbc2   :  { %v1087_v60 = vpack.c.bf16 %v1086_v59, %v1085_v58 }
 0xbc4   :  { %1661 = vmatmul.mubr.msk.bf16.vlgmr.msra.gmra.mxu1 %vm51_vm0, %v1087_v60 }
 0xbc5   :  { %1688 = vmatprep.mubr.msk.bf16.mxu1 %vm1796_vm1, %v1795_v15  ;;  %1673 = vmatpush3.bf16.msra.mxu1 %v1717_v39 }
 0xbc6   :  { %1674 = vmatprep.subr.bf16.mxu1 %v1795_v15 }
 0xbc9   :  { %1675 = vmatpush3.bf16.msra.mxu1 %v1718_v40 }
 0xbca   :  { %1676 = vmatprep.subr.bf16.mxu1 %v1795_v15 }
 0xbcd   :  { %1677 = vmatpush3.bf16.msra.mxu1 %v1719_v41 }
 0xbce   :  { %1678 = vmatprep.subr.bf16.mxu1 %v1795_v15 }
 0xbd1   :  { %1679 = vmatpush3.bf16.msra.mxu1 %v1720_v42 }
 0xbd2   :  { %1680 = vmatprep.subr.bf16.mxu1 %v1795_v15 }
 0xbd5   :  { %1681 = vmatpush3.bf16.msra.mxu1 %v1721_v43 }
 0xbd6   :  { %1682 = vmatprep.subr.bf16.mxu1 %v1795_v15 }
 0xbd9   :  { %1683 = vmatpush3.bf16.msra.mxu1 %v1722_v35  ;;  %v1489_v35 = vld [vmem:[%s2169_s12] ss:$0 sm:$0xff] }
 0xbda   :  { %1684 = vmatprep.subr.bf16.mxu1 %v1795_v15 }
 0xbdd   :  { %1685 = vmatpush3.bf16.msra.mxu1 %v1723_v44 }
 0xbde   :  { %1686 = vmatprep.subr.bf16.mxu1 %v1795_v15 }
 0xbe1   :  { %1687 = vmatpush3.bf16.msra.mxu1 %v1724_v46 }
 0xc84   :  { %v1148_v62 = vpop.f32.mrf.mxu1 }
 0xc85   :  { %v1149_v63 = vadd.f32 %v1479_v61, %v1148_v62 }
 0xc86   :  { %v1662_v2 = vpop.f32.mrf.mxu1 }
 0xc87   :  { %v2085_v3 = vadd.f32 %v1149_v63, %v1887_v0 }
 0xc88   :  { %v1151_v4 = vpop.f32.mrf.mxu1 }
 0xc89   :  { %v1152_v5 = vadd.f32 %v1479_v61, %v1151_v4  ;;  %v1159_v6 = vsel %vm51_vm0, %v2085_v3, 0.0 }
 0xc8a   :  { %1160 = vadd.xlane.f32.xlu0 %v1159_v6  ;;  %v1663_v7 = vpop.f32.mrf.mxu1 }
 0xc8b   :  { %v2090_v8 = vadd.f32 %v1152_v5, %v1892_v1 }
 0xc8d   :  { %v1162_v9 = vsel %vm51_vm0, %v2090_v8, 0.0 }
 0xc8e   :  { %1163 = vadd.xlane.f32.xlu1 %v1162_v9 }
 0xd13   :  { %v1161_v10 = vpop.xlane.xlu0 %1160 }
 0xd14   :  { %v1165_v11 = vmul.f32 0.03125, %v1161_v10 }
 0xd16   :  { %v1167_v12 = vsub.f32 %v2085_v3, %v1165_v11 }
 0xd17   :  { %v1164_v0 = vpop.xlane.xlu1 %1163 }
 0xd18   :  { %v1166_v13 = vmul.f32 0.03125, %v1164_v0  ;;  %v1169_v16 = vmul.f32 %v1167_v12, %v1167_v12 }
 0xd1a   :  { %v1168_v17 = vsub.f32 %v2090_v8, %v1166_v13  ;;  %v1171_v18 = vsel %vm51_vm0, %v1169_v16, 0.0 }
 0xd1b   :  { %1172 = vadd.xlane.f32.xlu0 %v1171_v18 }
 0xd1c   :  { %v1170_v20 = vmul.f32 %v1168_v17, %v1168_v17 }
 0xd1e   :  { %v1174_v1 = vsel %vm51_vm0, %v1170_v20, 0.0 }
 0xd1f   :  { %1175 = vadd.xlane.f32.xlu0 %v1174_v1 }
 0xda4   :  { %v1173_v23 = vpop.xlane.xlu0 %1172 }
 0xda5   :  { %v1177_v24 = vmul.f32 0.03125, %v1173_v23 }
 0xda7   :  { %v1179_v25 = vadd.f32 1e-05, %v1177_v24 }
 0xda8   :  { %v1176_v26 = vpop.xlane.xlu0 %1175 }
 0xda9   :  { %1761 = vrsqrt.f32 %v1179_v25  ;;  %v1178_v27 = vmul.f32 0.03125, %v1176_v26 }
 0xdab   :  { %v1180_v28 = vadd.f32 1e-05, %v1178_v27 }
 0xdad   :  { %1763 = vrsqrt.f32 %v1180_v28 }
 0xdb6   :  { %v1762_v38 = vpop.eup %1761 }
 0xdb7   :  { %v1183_v14 = vmul.f32 %v1762_v38, %v1167_v12 }
 0xdb9   :  { %v1191_v31 = vmul.f32 %v1483_v19, %v1183_v14 }
 0xdba   :  { %v1764_v29 = vpop.eup %1763 }
 0xdbb   :  { %v1184_v30 = vmul.f32 %v1764_v29, %v1168_v17  ;;  %v1199_v34 = vadd.f32 %v1484_v32, %v1191_v31 }
 0xdbd   :  { %v1192_v33 = vmul.f32 %v1483_v19, %v1184_v30 }
 0xdbf   :  { %v1200_v36 = vadd.f32 %v1484_v32, %v1192_v33 }
 0xdc1   :  { %v1201_v37 = vpack.c.bf16 %v1200_v36, %v1199_v34 }
 0xdc3   :  { %1669 = vmatmul.mubr.msk.bf16.vlgmr.msra.gmra.mxu0 %vm51_vm0, %v1201_v37 }
 0xe83   :  { %v1262_v47 = vpop.f32.mrf.mxu0 }
 0xe84   :  { %v1263_v49 = vadd.f32 %v1485_v48, %v1262_v47 }
 0xe85   :  { %v1670_v50 = vpop.f32.mrf.mxu0 }
 0xe86   :  { %v1271_v51 = vmul.f32 0.70710677, %v1263_v49  ;;  %v1269_v37 = vmul.f32 0.5, %v1263_v49 }
 0xe87   :  { %v1265_v52 = vpop.f32.mrf.mxu0 }
 0xe88   :  { %vm1273_vm7 = vcmp.ge.f32.partialorder %v1271_v51, 0.0  ;;  %v1266_v53 = vadd.f32 %v1485_v48, %v1265_v52 }
 0xe89   :  { %v1275_v55 = vsel %vm1273_vm7, 1.0, %v1811_v54  ;;  %v1671_v56 = vpop.f32.mrf.mxu0 }
 0xe8a   :  { %v1277_v15 = vmul.f32 %v1275_v55, %v1271_v51  ;;  %v1272_v45 = vmul.f32 0.70710677, %v1266_v53  ;;  %v1270_v39 = vmul.f32 0.5, %v1266_v53 }
 0xe8c   :  { %v1279_v57 = vmul.f32 0.3275911, %v1277_v15  ;;  %vm1274_vm8 = vcmp.ge.f32.partialorder %v1272_v45, 0.0  ;;  %v1303_v63 = vsub.f32 0.0, %v1277_v15 }
 0xe8d   :  { %v1276_v58 = vsel %vm1274_vm8, 1.0, %v1811_v54 }
 0xe8e   :  { %v1281_v59 = vadd.f32 1.0, %v1279_v57  ;;  %v1278_v60 = vmul.f32 %v1276_v58, %v1272_v45  ;;  %v1305_v2 = vmul.f32 %v1303_v63, %v1277_v15 }
 0xe90   :  { %1765 = vrcp.f32 %v1281_v59  ;;  %v1280_v61 = vmul.f32 0.3275911, %v1278_v60  ;;  %v1304_v4 = vsub.f32 0.0, %v1278_v60  ;;  %v1307_v7 = vmul.f32 1.442695, %v1305_v2 }
 0xe92   :  { %v1282_v62 = vadd.f32 1.0, %v1280_v61  ;;  %v1306_v9 = vmul.f32 %v1304_v4, %v1278_v60 }
 0xe94   :  { %1767 = vrcp.f32 %v1282_v62  ;;  %v1309_v13 = vmul.f32 1.442695, %v1306_v9 }
 0xe95   :  { %1769 = vpow2.f32 %v1307_v7 }
 0xe96   :  { %1771 = vpow2.f32 %v1309_v13 }
 0xe9d   :  { %v1766_v5 = vpop.eup %1765 }
 0xe9e   :  { %v1285_v6 = vmul.f32 1.0614054, %v1766_v5 }
 0xea0   :  { %v1287_v10 = vadd.f32 -1.4531521, %v1285_v6 }
 0xea1   :  { %v1768_v11 = vpop.eup %1767 }
 0xea2   :  { %v1289_v12 = vmul.f32 %v1766_v5, %v1287_v10  ;;  %v1286_v0 = vmul.f32 1.0614054, %v1768_v11  ;;  %v1770_v28 = vpop.eup %1769 }
 0xea3   :  { %v1772_v30 = vpop.eup %1771 }
 0xea4   :  { %v1291_v16 = vadd.f32 1.4214138, %v1289_v12  ;;  %v1288_v17 = vadd.f32 -1.4531521, %v1286_v0 }
 0xea6   :  { %v1293_v18 = vmul.f32 %v1766_v5, %v1291_v16  ;;  %v1290_v20 = vmul.f32 %v1768_v11, %v1288_v17 }
 0xea8   :  { %v1295_v1 = vadd.f32 -0.28449672, %v1293_v18  ;;  %v1292_v21 = vadd.f32 1.4214138, %v1290_v20 }
 0xeaa   :  { %v1297_v22 = vmul.f32 %v1766_v5, %v1295_v1  ;;  %v1294_v23 = vmul.f32 %v1768_v11, %v1292_v21 }
 0xeac   :  { %v1299_v24 = vadd.f32 0.2548296, %v1297_v22  ;;  %v1296_v25 = vadd.f32 -0.28449672, %v1294_v23 }
 0xeae   :  { %v1301_v26 = vmul.f32 %v1766_v5, %v1299_v24  ;;  %v1298_v27 = vmul.f32 %v1768_v11, %v1296_v25 }
 0xeb0   :  { %v1311_v38 = vmul.f32 %v1770_v28, %v1301_v26  ;;  %v1300_v14 = vadd.f32 0.2548296, %v1298_v27 }
 0xeb2   :  { %v1313_v19 = vsub.f32 1.0, %v1311_v38  ;;  %v1302_v29 = vmul.f32 %v1768_v11, %v1300_v14 }
 0xeb4   :  { %v1315_v31 = vmul.f32 %v1313_v19, %v1275_v55  ;;  %v1312_v32 = vmul.f32 %v1772_v30, %v1302_v29 }
 0xeb6   :  { %v1314_v33 = vsub.f32 1.0, %v1312_v32  ;;  %v1317_v34 = vadd.f32 1.0, %v1315_v31 }
 0xeb8   :  { %v1316_v36 = vmul.f32 %v1314_v33, %v1276_v58  ;;  %v1319_v41 = vmul.f32 %v1317_v34, %v1269_v37 }
 0xeba   :  { %v1318_v40 = vadd.f32 1.0, %v1316_v36 }
 0xebc   :  { %v1320_v42 = vmul.f32 %v1318_v40, %v1270_v39 }
 0xebe   :  { %v1321_v43 = vpack.c.bf16 %v1320_v42, %v1319_v41 }
 0xec0   :  { %1689 = vmatmul.mubr.bf16.vlgmr.msra.gmra.mxu1 %v1321_v43 }
 0xf80   :  { %v1427_v44 = vpop.f32.mrf.mxu1 }
 0xf81   :  { %v1428_v46 = vadd.f32 %v1489_v35, %v1427_v44 }
 0xf82   :  { %v1690_v48 = vpop.f32.mrf.mxu1 }
 0xf83   :  { %v1434_v47 = vadd.f32 %v1428_v46, %v2085_v3 }
 0xf84   :  { %v1430_v50 = vpop.f32.mrf.mxu1 }
 0xf85   :  { %1436 = vst.msk [vmem:[#allocation4] sm:$0xff] %vm51_vm0, %v1434_v47  ;;  %v1431_v49 = vadd.f32 %v1489_v35, %v1430_v50 }
 0xf86   :  { %v1691_v51 = vpop.f32.mrf.mxu1 }
 0xf87   :  { %v1435_v52 = vadd.f32 %v1431_v49, %v2090_v8 }
 0xf89   :  { %1437 = vst.msk [vmem:[#allocation4 + $0x8] sm:$0xff] %vm51_vm0, %v1435_v52 }
 0xf8a   :  { %1784 = shalt.err (!%p1781_p4)
}
 0xf8b   :  { %s1813_s12 = smov 128  }
 0xf8c   :  { %1449 = dma.vmem_to_hbm [thread:$0]  %s1444_s17, 256, %s2170_s13, [#allocation5], %s1813_s12, %s1813_s12, %s1808_s28  }
 0xf8d   :  { %1793 = dma.done.wait [#allocation5], 256  }
 0xf8e   :  { %1794 = vsyncadd [#allocation5], 4294967040 }
 0xf8f   :  { %1453 = vsyncpa [#allocation5], 1 }

</bundles_post_ra>
